<compile_context>
chip_gen: v6e
topology: v6e:2x2x1
jax: 0.10.0
libtpu: 0.0.40
codegen_flags: <defaults>
</compile_context>

<pallas_src>
import math

import jax
import jax.numpy as jnp
from jax.experimental import pallas as pl
from jax.experimental.pallas import tpu as pltpu

# ----------------------------- config (small) --------------------------------
B = 2              # batch
S = 8              # sequence length
H = 32             # hidden size
NUM_HEADS = 2
D_HEAD = H // NUM_HEADS
FFN = 64           # intermediate size
NUM_LAYERS = 2
VOCAB = 100
NUM_CLASSES = 2
LOGITS_PAD = 128   # lane-dense logits store; sliced to NUM_CLASSES in the wrapper
OUT_SUBLANES = 8   # sublane-dense logits block
LN_EPS = 1e-12     # BERT layer-norm epsilon

ATTN_COLS = max(3 * D_HEAD, H)   # column width of the packed attention weight slab
FFN_COLS = max(FFN, H)           # column width of the packed FFN weight slab
VEC_ROWS = 16                    # rows per layer in the packed bias/LN slab

# row indices inside the per-layer bias/LN slab (rows 0..NUM_HEADS-1 are bqkv per head)
R_BO = NUM_HEADS
R_LN1G = NUM_HEADS + 1
R_LN1B = NUM_HEADS + 2
R_B1 = NUM_HEADS + 3
R_B2 = NUM_HEADS + 4
R_LN2G = NUM_HEADS + 5
R_LN2B = NUM_HEADS + 6


def _gelu_tanh(x):
    # TODO(synk): exact erf-based GELU (HF BERT default) has no clean Mosaic lowering;
    # tanh approximation ("gelu_new") is used instead.
    return 0.5 * x * (1.0 + jnp.tanh(
        jnp.sqrt(2.0 / jnp.pi) * (x + 0.044715 * x * x * x)))


def _layernorm(v, g, b):
    mu = jnp.mean(v, axis=-1, keepdims=True)
    var = jnp.mean((v - mu) ** 2, axis=-1, keepdims=True)
    return (v - mu) * jax.lax.rsqrt(var + LN_EPS) * g + b


# ----------------------------- fused Pallas kernel ----------------------------
def bert_fused_kernel(x_ref, mask_ref, w_attn_ref, w_ffn_ref, vec_ref, w_head_ref,
                      out_ref):
    """One batch element per grid step: encoder stack + tanh pooler + classifier.

    Shapes seen by the kernel (batch dim squeezed away by the BlockSpec):
      x_ref      : (S, H)              f32  activations for this batch element
      mask_ref   : (1, S)              f32  additive attention mask (0 / -1e4)
      w_attn_ref : (L, NH, H+D, AC)    bf16 rows [0:H]   = head-major QKV weights
                                            rows [H:H+D] = head-major Wo (cols [0:H])
      w_ffn_ref  : (L, H+FFN, FC)      bf16 rows [0:H] = W1, rows [H:H+FFN] = W2 (cols [0:H])
      vec_ref    : (L+1, VEC_ROWS,128) f32  per-layer biases/LN rows; slab L = pooler/cls biases
      w_head_ref : (H, 128+H)          bf16 cols [0:128] = classifier (lane-padded), [128:] = pooler
      out_ref    : (OUT_SUBLANES, 128) f32  lane-dense logits (row 0 is the real one)
    """
    x = x_ref[...]                                                  # (S, H) f32

    # Additive mask broadcast hoisted once (JAX does not CSE broadcast_in_dim).
    mask_hqk = jnp.broadcast_to(mask_ref[...][None, :, :],
                                (NUM_HEADS, S, S))                  # (NH, S, S)

    for l in range(NUM_LAYERS):                                     # static unroll
        # ---- static slices out of the bundled slabs -------------------------
        wqkv = w_attn_ref[l, :, 0:H, 0:3 * D_HEAD]                  # (NH, H, 3D) bf16
        wo = w_attn_ref[l, :, H:H + D_HEAD, 0:H]                    # (NH, D, H)  bf16
        w1 = w_ffn_ref[l, 0:H, 0:FFN]                               # (H, FFN)    bf16
        w2 = w_ffn_ref[l, H:H + FFN, 0:H]                           # (FFN, H)    bf16
        bqkv = vec_ref[l, 0:NUM_HEADS, 0:3 * D_HEAD]                # (NH, 3D)    f32
        bo = vec_ref[l, R_BO:R_BO + 1, 0:H]                         # (1, H)
        ln1g = vec_ref[l, R_LN1G:R_LN1G + 1, 0:H]
        ln1b = vec_ref[l, R_LN1B:R_LN1B + 1, 0:H]
        b1 = vec_ref[l, R_B1:R_B1 + 1, 0:FFN]
        b2 = vec_ref[l, R_B2:R_B2 + 1, 0:H]
        ln2g = vec_ref[l, R_LN2G:R_LN2G + 1, 0:H]
        ln2b = vec_ref[l, R_LN2B:R_LN2B + 1, 0:H]

        # ---- head-batched QKV projection (1/sqrt(d) pre-folded into Q) ------
        xb = jnp.broadcast_to(x.astype(jnp.bfloat16)[None, :, :],
                              (NUM_HEADS, S, H))                    # (NH, S, H) bf16
        qkv = jnp.einsum('hsk,hkd->hsd', xb, wqkv,
                         preferred_element_type=jnp.float32)        # (NH, S, 3D)
        qkv = qkv + bqkv[:, None, :]
        q = qkv[:, :, 0:D_HEAD]
        k = qkv[:, :, D_HEAD:2 * D_HEAD]
        v = qkv[:, :, 2 * D_HEAD:3 * D_HEAD]

        # ---- attention: two head-batched einsums, no per-head loop/concat ---
        s = jnp.einsum('hqd,hkd->hqk', q.astype(jnp.bfloat16),
                       k.astype(jnp.bfloat16),
                       preferred_element_type=jnp.float32)          # (NH, S, S)
        s = s + mask_hqk
        s = s - jnp.max(s, axis=-1, keepdims=True)
        p = jnp.exp(s)
        p = p * pl.reciprocal(jnp.sum(p, axis=-1, keepdims=True), approx=True)
        ctx = jnp.einsum('hqk,hkd->hqd', p.astype(jnp.bfloat16),
                         v.astype(jnp.bfloat16),
                         preferred_element_type=jnp.float32)        # (NH, S, D)

        # ---- output projection: head-batched matmul + head-sum --------------
        attn = jnp.einsum('hqd,hdk->hqk', ctx.astype(jnp.bfloat16), wo,
                          preferred_element_type=jnp.float32)       # (NH, S, H)
        attn = jnp.sum(attn, axis=0) + bo                           # (S, H)

        h1 = _layernorm(x + attn, ln1g, ln1b)

        # ---- FFN -------------------------------------------------------------
        ff = jnp.dot(h1.astype(jnp.bfloat16), w1,
                     preferred_element_type=jnp.float32) + b1
        ff = _gelu_tanh(ff)
        ff = jnp.dot(ff.astype(jnp.bfloat16), w2,
                     preferred_element_type=jnp.float32) + b2

        x = _layernorm(h1 + ff, ln2g, ln2b)

    # ---- pooler (tanh on [CLS]) + classifier; lane-dense (8x128) store -------
    cls = x[0:1, :]                                                 # (1, H)
    bp = vec_ref[NUM_LAYERS, 0:1, 0:H]                              # (1, H)
    bc = vec_ref[NUM_LAYERS, 1:2, :]                                # (1, 128)
    wc = w_head_ref[:, 0:LOGITS_PAD]                                # (H, 128) bf16
    wp = w_head_ref[:, LOGITS_PAD:LOGITS_PAD + H]                   # (H, H)   bf16
    pooled = jnp.tanh(jnp.dot(cls.astype(jnp.bfloat16), wp,
                              preferred_element_type=jnp.float32) + bp)
    # TODO(synk): training-mode nn.Dropout(dr_rate) omitted; eval-mode dropout is identity.
    logits = jnp.dot(pooled.astype(jnp.bfloat16), wc,
                     preferred_element_type=jnp.float32) + bc       # (1, 128)
    out_ref[...] = jnp.broadcast_to(logits, (OUT_SUBLANES, LOGITS_PAD)).astype(out_ref.dtype)


# ----------------------------- wrappers ---------------------------------------
def run_bert_fused(x_emb, add_mask, kernel_params):
    w_attn, w_ffn, vec, w_head = kernel_params
    logits_pad = pl.pallas_call(
        bert_fused_kernel,
        grid=(B,),                                   # batch is a parallel axis (v7x: 2 TCs)
        out_shape=jax.ShapeDtypeStruct((B, OUT_SUBLANES, LOGITS_PAD), jnp.float32),
        in_specs=[
            pl.BlockSpec((None, S, H), lambda b: (b, 0, 0)),       # x          (per-batch)
            pl.BlockSpec((None, 1, S), lambda b: (b, 0, 0)),       # add_mask   (per-batch)
            pl.BlockSpec(w_attn.shape, lambda b: (0, 0, 0, 0)),    # weights stay resident
            pl.BlockSpec(w_ffn.shape, lambda b: (0, 0, 0)),
            pl.BlockSpec(vec.shape, lambda b: (0, 0, 0)),
            pl.BlockSpec(w_head.shape, lambda b: (0, 0)),
        ],
        out_specs=pl.BlockSpec((None, OUT_SUBLANES, LOGITS_PAD), lambda b: (b, 0, 0)),
        compiler_params=pltpu.CompilerParams(dimension_semantics=("parallel",)),
    )(x_emb, add_mask, w_attn, w_ffn, vec, w_head)
    return logits_pad[:, 0, :NUM_CLASSES]


def init_params(key):
    def nrm(k, shape, std=0.02):
        return jax.random.normal(k, shape, jnp.float32) * std

    keys = iter(jax.random.split(key, 64))
    params = {
        "tok_emb": nrm(next(keys), (VOCAB, H)),
        "seg_emb": nrm(next(keys), (2, H)),
        "pos_emb": nrm(next(keys), (S, H)),
        "emb_ln_g": jnp.ones((1, H), jnp.float32),
        "emb_ln_b": jnp.zeros((1, H), jnp.float32),
        "layers": [],
        "wp": nrm(next(keys), (H, H)),
        "bp": jnp.zeros((1, H), jnp.float32),
        "wc": nrm(next(keys), (H, NUM_CLASSES)),
        "bc": jnp.zeros((1, NUM_CLASSES), jnp.float32),
    }
    for _ in range(NUM_LAYERS):
        params["layers"].append(dict(
            wq=nrm(next(keys), (H, H)), bq=jnp.zeros((1, H), jnp.float32),
            wk=nrm(next(keys), (H, H)), bk=jnp.zeros((1, H), jnp.float32),
            wv=nrm(next(keys), (H, H)), bv=jnp.zeros((1, H), jnp.float32),
            wo=nrm(next(keys), (H, H)), bo=jnp.zeros((1, H), jnp.float32),
            ln1g=jnp.ones((1, H), jnp.float32), ln1b=jnp.zeros((1, H), jnp.float32),
            w1=nrm(next(keys), (H, FFN)), b1=jnp.zeros((1, FFN), jnp.float32),
            w2=nrm(next(keys), (FFN, H)), b2=jnp.zeros((1, H), jnp.float32),
            ln2g=jnp.ones((1, H), jnp.float32), ln2b=jnp.zeros((1, H), jnp.float32),
        ))
    return params


def prepare_kernel_params(params):
    """One-time prep: bundle per-layer params into 4 slabs.

      w_attn : (L, NH, H+D, ATTN_COLS) bf16  head-major QKV (1/sqrt(d) folded into Q) + Wo rows
      w_ffn  : (L, H+FFN, FFN_COLS)    bf16  W1 rows then W2 rows
      vec    : (L+1, VEC_ROWS, 128)    f32   biases / LN params, one padded row each
      w_head : (H, 128+H)              bf16  [classifier (lane-padded to 128) | pooler]
    """
    scale = 1.0 / math.sqrt(D_HEAD)
    w_attn_layers, w_ffn_layers, vec_layers = [], [], []
    for lyr in params["layers"]:
        wq = lyr["wq"] * scale
        bq = lyr["bq"] * scale
        per_head = []
        for h in range(NUM_HEADS):
            lo, hi = h * D_HEAD, (h + 1) * D_HEAD
            w_h = jnp.concatenate(
                [wq[:, lo:hi], lyr["wk"][:, lo:hi], lyr["wv"][:, lo:hi]], axis=1)   # (H, 3D)
            w_h = jnp.pad(w_h, ((0, 0), (0, ATTN_COLS - 3 * D_HEAD)))
            wo_h = jnp.pad(lyr["wo"][lo:hi, :], ((0, 0), (0, ATTN_COLS - H)))       # (D, AC)
            per_head.append(jnp.concatenate([w_h, wo_h], axis=0))                  # (H+D, AC)
        w_attn_layers.append(jnp.stack(per_head, axis=0))                          # (NH, H+D, AC)

        w1_pad = jnp.pad(lyr["w1"], ((0, 0), (0, FFN_COLS - FFN)))
        w2_pad = jnp.pad(lyr["w2"], ((0, 0), (0, FFN_COLS - H)))
        w_ffn_layers.append(jnp.concatenate([w1_pad, w2_pad], axis=0))             # (H+FFN, FC)

        bqkv = jnp.stack([
            jnp.concatenate([bq[0, h * D_HEAD:(h + 1) * D_HEAD],
                             lyr["bk"][0, h * D_HEAD:(h + 1) * D_HEAD],
                             lyr["bv"][0, h * D_HEAD:(h + 1) * D_HEAD]])
            for h in range(NUM_HEADS)], axis=0)                                     # (NH, 3D)
        slab = jnp.zeros((VEC_ROWS, 128), jnp.float32)
        slab = slab.at[0:NUM_HEADS, 0:3 * D_HEAD].set(bqkv)
        slab = slab.at[R_BO, 0:H].set(lyr["bo"][0])
        slab = slab.at[R_LN1G, 0:H].set(lyr["ln1g"][0])
        slab = slab.at[R_LN1B, 0:H].set(lyr["ln1b"][0])
        slab = slab.at[R_B1, 0:FFN].set(lyr["b1"][0])
        slab = slab.at[R_B2, 0:H].set(lyr["b2"][0])
        slab = slab.at[R_LN2G, 0:H].set(lyr["ln2g"][0])
        slab = slab.at[R_LN2B, 0:H].set(lyr["ln2b"][0])
        vec_layers.append(slab)

    head_slab = jnp.zeros((VEC_ROWS, 128), jnp.float32)
    head_slab = head_slab.at[0, 0:H].set(params["bp"][0])
    head_slab = head_slab.at[1, 0:NUM_CLASSES].set(params["bc"][0])
    vec = jnp.stack(vec_layers + [head_slab], axis=0)                              # (L+1, 16, 128)

    wc_pad = jnp.pad(params["wc"], ((0, 0), (0, LOGITS_PAD - NUM_CLASSES)))        # (H, 128)
    w_head = jnp.concatenate([wc_pad, params["wp"]], axis=1)                       # (H, 128+H)

    return (jnp.stack(w_attn_layers, axis=0).astype(jnp.bfloat16),
            jnp.stack(w_ffn_layers, axis=0).astype(jnp.bfloat16),
            vec,
            w_head.astype(jnp.bfloat16))


@jax.jit
def bert_classifier_forward(emb_params, kernel_params, token_ids, valid_length, segment_ids):
    # gen_attention_mask: 1 for positions < valid_length[i], else 0; converted once to
    # the BERT additive form (0 attendable / -1e4 padded) and shaped (B, 1, S) in the wrapper.
    attention_mask = (jnp.arange(S, dtype=jnp.int32)[None, :]
                      < valid_length[:, None]).astype(jnp.float32)                 # (B, S)
    add_mask = ((attention_mask - 1.0) * 10000.0)[:, None, :]                      # (B, 1, S)

    # embeddings (table gathers) + embedding LayerNorm -- glue in plain JAX.
    x = (jnp.take(emb_params["tok_emb"], token_ids, axis=0)
         + jnp.take(emb_params["seg_emb"], segment_ids, axis=0)
         + emb_params["pos_emb"][None, :, :])                                      # (B, S, H)
    x = _layernorm(x, emb_params["emb_ln_g"], emb_params["emb_ln_b"])

    # single fused Pallas launch: encoder stack + pooler + dropout(identity) + classifier.
    return run_bert_fused(x, add_mask, kernel_params)


if __name__ == "__main__":
    key = jax.random.PRNGKey(0)
    k_param, k_tok, k_seg = jax.random.split(key, 3)

    params = init_params(k_param)
    kernel_params = prepare_kernel_params(params)
    emb_params = {k: params[k] for k in
                  ("tok_emb", "seg_emb", "pos_emb", "emb_ln_g", "emb_ln_b")}

    token_ids = jax.random.randint(k_tok, (B, S), 0, VOCAB, dtype=jnp.int32)
    segment_ids = jax.random.randint(k_seg, (B, S), 0, 2, dtype=jnp.int32)
    valid_length = jnp.array([5, S], dtype=jnp.int32)

    logits = bert_classifier_forward(emb_params, kernel_params,
                                     token_ids, valid_length, segment_ids)
    logits = jax.block_until_ready(logits)
    assert logits.shape == (B, NUM_CLASSES)
    assert bool(jnp.all(jnp.isfinite(logits)))
    print("KERNEL_OK")
</pallas_src>

<mosaic_0001>
module attributes {stable_mosaic.version = 11 : i64} {
  func.func @bert_fused_kernel(%arg0: i32, %arg1: memref<1x8x32xf32, #tpu.memory_space<vmem>>, %arg2: memref<1x1x8xf32, #tpu.memory_space<vmem>>, %arg3: memref<2x2x48x48xbf16, #tpu.memory_space<vmem>>, %arg4: memref<2x96x64xbf16, #tpu.memory_space<vmem>>, %arg5: memref<3x16x128xf32, #tpu.memory_space<vmem>>, %arg6: memref<32x160xbf16, #tpu.memory_space<vmem>>, %arg7: memref<1x8x128xf32, #tpu.memory_space<vmem>>) attributes {dimension_semantics = [#tpu.dimension_semantics<parallel>], iteration_bounds = array<i64: 2>, scalar_prefetch = 0 : i64, scratch_operands = 0 : i64, tpu.core_type = #tpu.core_type<tc>, window_params = [{transform_indices = @transform_0, window_bounds = array<i64: 1, 8, 32>}, {transform_indices = @transform_1, window_bounds = array<i64: 1, 1, 8>}, {pipeline_mode = #tpu.pipeline_mode<synchronous>, transform_indices = @transform_2, window_bounds = array<i64: 2, 2, 48, 48>}, {pipeline_mode = #tpu.pipeline_mode<synchronous>, transform_indices = @transform_3, window_bounds = array<i64: 2, 96, 64>}, {pipeline_mode = #tpu.pipeline_mode<synchronous>, transform_indices = @transform_4, window_bounds = array<i64: 3, 16, 128>}, {pipeline_mode = #tpu.pipeline_mode<synchronous>, transform_indices = @transform_5, window_bounds = array<i64: 32, 160>}, {transform_indices = @transform_6, window_bounds = array<i64: 1, 8, 128>}]} {
    %c0 = arith.constant 0 : index
    %c0_0 = arith.constant 0 : index
    %c0_1 = arith.constant 0 : index
    %0 = vector.load %arg1[%c0, %c0_0, %c0_1] : memref<1x8x32xf32, #tpu.memory_space<vmem>>, vector<1x8x32xf32>
    %1 = vector.shape_cast %0 : vector<1x8x32xf32> to vector<8x32xf32>
    %c0_2 = arith.constant 0 : index
    %c0_3 = arith.constant 0 : index
    %c0_4 = arith.constant 0 : index
    %2 = vector.load %arg2[%c0_2, %c0_3, %c0_4] : memref<1x1x8xf32, #tpu.memory_space<vmem>>, vector<1x1x8xf32>
    %3 = vector.shape_cast %2 : vector<1x1x8xf32> to vector<1x8xf32>
    %4 = vector.shape_cast %3 : vector<1x8xf32> to vector<1x1x8xf32>
    %5 = vector.shape_cast %4 : vector<1x1x8xf32> to vector<1x1x8xf32>
    %6 = vector.broadcast %5 : vector<1x1x8xf32> to vector<2x8x8xf32>
    %c0_5 = arith.constant 0 : index
    %c0_6 = arith.constant 0 : index
    %c0_7 = arith.constant 0 : index
    %c0_8 = arith.constant 0 : index
    %7 = vector.load %arg3[%c0_5, %c0_6, %c0_7, %c0_8] : memref<2x2x48x48xbf16, #tpu.memory_space<vmem>>, vector<1x2x32x48xbf16>
    %8 = vector.shape_cast %7 : vector<1x2x32x48xbf16> to vector<2x32x48xbf16>
    %c0_9 = arith.constant 0 : index
    %c0_10 = arith.constant 0 : index
    %c32 = arith.constant 32 : index
    %c0_11 = arith.constant 0 : index
    %9 = vector.load %arg3[%c0_9, %c0_10, %c32, %c0_11] : memref<2x2x48x48xbf16, #tpu.memory_space<vmem>>, vector<1x2x16x32xbf16>
    %10 = vector.shape_cast %9 : vector<1x2x16x32xbf16> to vector<2x16x32xbf16>
    %c0_12 = arith.constant 0 : index
    %c0_13 = arith.constant 0 : index
    %c0_14 = arith.constant 0 : index
    %11 = vector.load %arg4[%c0_12, %c0_13, %c0_14] : memref<2x96x64xbf16, #tpu.memory_space<vmem>>, vector<1x32x64xbf16>
    %12 = vector.shape_cast %11 : vector<1x32x64xbf16> to vector<32x64xbf16>
    %c0_15 = arith.constant 0 : index
    %c32_16 = arith.constant 32 : index
    %c0_17 = arith.constant 0 : index
    %13 = vector.load %arg4[%c0_15, %c32_16, %c0_17] : memref<2x96x64xbf16, #tpu.memory_space<vmem>>, vector<1x64x32xbf16>
    %14 = vector.shape_cast %13 : vector<1x64x32xbf16> to vector<64x32xbf16>
    %c0_18 = arith.constant 0 : index
    %c0_19 = arith.constant 0 : index
    %c0_20 = arith.constant 0 : index
    %15 = vector.load %arg5[%c0_18, %c0_19, %c0_20] : memref<3x16x128xf32, #tpu.memory_space<vmem>>, vector<1x2x48xf32>
    %16 = vector.shape_cast %15 : vector<1x2x48xf32> to vector<2x48xf32>
    %c0_21 = arith.constant 0 : index
    %c2 = arith.constant 2 : index
    %c0_22 = arith.constant 0 : index
    %17 = vector.load %arg5[%c0_21, %c2, %c0_22] : memref<3x16x128xf32, #tpu.memory_space<vmem>>, vector<1x1x32xf32>
    %18 = vector.shape_cast %17 : vector<1x1x32xf32> to vector<1x32xf32>
    %c0_23 = arith.constant 0 : index
    %c3 = arith.constant 3 : index
    %c0_24 = arith.constant 0 : index
    %19 = vector.load %arg5[%c0_23, %c3, %c0_24] : memref<3x16x128xf32, #tpu.memory_space<vmem>>, vector<1x1x32xf32>
    %20 = vector.shape_cast %19 : vector<1x1x32xf32> to vector<1x32xf32>
    %c0_25 = arith.constant 0 : index
    %c4 = arith.constant 4 : index
    %c0_26 = arith.constant 0 : index
    %21 = vector.load %arg5[%c0_25, %c4, %c0_26] : memref<3x16x128xf32, #tpu.memory_space<vmem>>, vector<1x1x32xf32>
    %22 = vector.shape_cast %21 : vector<1x1x32xf32> to vector<1x32xf32>
    %c0_27 = arith.constant 0 : index
    %c5 = arith.constant 5 : index
    %c0_28 = arith.constant 0 : index
    %23 = vector.load %arg5[%c0_27, %c5, %c0_28] : memref<3x16x128xf32, #tpu.memory_space<vmem>>, vector<1x1x64xf32>
    %24 = vector.shape_cast %23 : vector<1x1x64xf32> to vector<1x64xf32>
    %c0_29 = arith.constant 0 : index
    %c6 = arith.constant 6 : index
    %c0_30 = arith.constant 0 : index
    %25 = vector.load %arg5[%c0_29, %c6, %c0_30] : memref<3x16x128xf32, #tpu.memory_space<vmem>>, vector<1x1x32xf32>
    %26 = vector.shape_cast %25 : vector<1x1x32xf32> to vector<1x32xf32>
    %c0_31 = arith.constant 0 : index
    %c7 = arith.constant 7 : index
    %c0_32 = arith.constant 0 : index
    %27 = vector.load %arg5[%c0_31, %c7, %c0_32] : memref<3x16x128xf32, #tpu.memory_space<vmem>>, vector<1x1x32xf32>
    %28 = vector.shape_cast %27 : vector<1x1x32xf32> to vector<1x32xf32>
    %c0_33 = arith.constant 0 : index
    %c8 = arith.constant 8 : index
    %c0_34 = arith.constant 0 : index
    %29 = vector.load %arg5[%c0_33, %c8, %c0_34] : memref<3x16x128xf32, #tpu.memory_space<vmem>>, vector<1x1x32xf32>
    %30 = vector.shape_cast %29 : vector<1x1x32xf32> to vector<1x32xf32>
    %31 = arith.truncf %1 : vector<8x32xf32> to vector<8x32xbf16>
    %32 = vector.shape_cast %31 : vector<8x32xbf16> to vector<1x8x32xbf16>
    %33 = vector.shape_cast %32 : vector<1x8x32xbf16> to vector<1x8x32xbf16>
    %34 = vector.broadcast %33 : vector<1x8x32xbf16> to vector<2x8x32xbf16>
    "tpu.trace_start"() <{level = 10 : i32, message = "hsk,hkd->hsd"}> : () -> ()
    %cst = arith.constant dense<0.000000e+00> : vector<2x8x48xf32>
    %35 = tpu.matmul %34, %8, %cst {dimension_numbers = #tpu.dot_dimension_numbers<[2], [1], [1], [2], [0, 0, 0, 1, 1, 2], [0], [0]>} : vector<2x8x32xbf16>, vector<2x32x48xbf16>, vector<2x8x48xf32> -> vector<2x8x48xf32>
    "tpu.trace_stop"() : () -> ()
    %36 = vector.shape_cast %16 : vector<2x48xf32> to vector<2x1x48xf32>
    %37 = vector.broadcast %36 : vector<2x1x48xf32> to vector<2x8x48xf32>
    %38 = arith.addf %35, %37 : vector<2x8x48xf32>
    %39 = vector.extract_strided_slice %38 {offsets = [0, 0, 0], sizes = [2, 8, 16], strides = [1, 1, 1]} : vector<2x8x48xf32> to vector<2x8x16xf32>
    %40 = vector.extract_strided_slice %38 {offsets = [0, 0, 16], sizes = [2, 8, 16], strides = [1, 1, 1]} : vector<2x8x48xf32> to vector<2x8x16xf32>
    %41 = vector.extract_strided_slice %38 {offsets = [0, 0, 32], sizes = [2, 8, 16], strides = [1, 1, 1]} : vector<2x8x48xf32> to vector<2x8x16xf32>
    %42 = arith.truncf %39 : vector<2x8x16xf32> to vector<2x8x16xbf16>
    %43 = arith.truncf %40 : vector<2x8x16xf32> to vector<2x8x16xbf16>
    "tpu.trace_start"() <{level = 10 : i32, message = "hqd,hkd->hqk"}> : () -> ()
    %cst_35 = arith.constant dense<0.000000e+00> : vector<2x8x8xf32>
    %44 = tpu.matmul %42, %43, %cst_35 {dimension_numbers = #tpu.dot_dimension_numbers<[2], [2], [1], [1], [0, 0, 0, 1, 1, 1], [0], [0]>} : vector<2x8x16xbf16>, vector<2x8x16xbf16>, vector<2x8x8xf32> -> vector<2x8x8xf32>
    "tpu.trace_stop"() : () -> ()
    %45 = arith.addf %44, %6 : vector<2x8x8xf32>
    %cst_36 = arith.constant dense<0xFF800000> : vector<2x8xf32>
    %46 = vector.multi_reduction <maximumf>, %45, %cst_36 [2] : vector<2x8x8xf32> to vector<2x8xf32>
    %47 = vector.shape_cast %46 : vector<2x8xf32> to vector<2x8x1xf32>
    %48 = vector.broadcast %47 : vector<2x8x1xf32> to vector<2x8x8xf32>
    %49 = arith.subf %45, %48 : vector<2x8x8xf32>
    %50 = math.exp %49 : vector<2x8x8xf32>
    %cst_37 = arith.constant dense<0.000000e+00> : vector<2x8xf32>
    %51 = vector.multi_reduction <add>, %50, %cst_37 [2] : vector<2x8x8xf32> to vector<2x8xf32>
    %52 = vector.shape_cast %51 : vector<2x8xf32> to vector<2x8x1xf32>
    %53 = tpu.reciprocal %52 {approx = true} : vector<2x8x1xf32> -> vector<2x8x1xf32>
    %54 = vector.broadcast %53 : vector<2x8x1xf32> to vector<2x8x8xf32>
    %55 = arith.mulf %50, %54 : vector<2x8x8xf32>
    %56 = arith.truncf %55 : vector<2x8x8xf32> to vector<2x8x8xbf16>
    %57 = arith.truncf %41 : vector<2x8x16xf32> to vector<2x8x16xbf16>
    "tpu.trace_start"() <{level = 10 : i32, message = "hqk,hkd->hqd"}> : () -> ()
    %cst_38 = arith.constant dense<0.000000e+00> : vector<2x8x16xf32>
    %58 = tpu.matmul %56, %57, %cst_38 {dimension_numbers = #tpu.dot_dimension_numbers<[2], [1], [1], [2], [0, 0, 0, 1, 1, 2], [0], [0]>} : vector<2x8x8xbf16>, vector<2x8x16xbf16>, vector<2x8x16xf32> -> vector<2x8x16xf32>
    "tpu.trace_stop"() : () -> ()
    %59 = arith.truncf %58 : vector<2x8x16xf32> to vector<2x8x16xbf16>
    "tpu.trace_start"() <{level = 10 : i32, message = "hqd,hdk->hqk"}> : () -> ()
    %cst_39 = arith.constant dense<0.000000e+00> : vector<2x8x32xf32>
    %60 = tpu.matmul %59, %10, %cst_39 {dimension_numbers = #tpu.dot_dimension_numbers<[2], [1], [1], [2], [0, 0, 0, 1, 1, 2], [0], [0]>} : vector<2x8x16xbf16>, vector<2x16x32xbf16>, vector<2x8x32xf32> -> vector<2x8x32xf32>
    "tpu.trace_stop"() : () -> ()
    %cst_40 = arith.constant dense<0.000000e+00> : vector<8x32xf32>
    %61 = vector.multi_reduction <add>, %60, %cst_40 [0] : vector<2x8x32xf32> to vector<8x32xf32>
    %62 = vector.broadcast %18 : vector<1x32xf32> to vector<8x32xf32>
    %63 = arith.addf %61, %62 : vector<8x32xf32>
    %64 = arith.addf %1, %63 : vector<8x32xf32>
    %cst_41 = arith.constant dense<0.000000e+00> : vector<8xf32>
    %65 = vector.multi_reduction <add>, %64, %cst_41 [1] : vector<8x32xf32> to vector<8xf32>
    %66 = vector.shape_cast %65 : vector<8xf32> to vector<8x1xf32>
    %cst_42 = arith.constant 3.200000e+01 : f32
    %67 = vector.broadcast %cst_42 : f32 to vector<8x1xf32>
    %68 = arith.divf %66, %67 : vector<8x1xf32>
    %69 = vector.broadcast %68 : vector<8x1xf32> to vector<8x32xf32>
    %70 = arith.subf %64, %69 : vector<8x32xf32>
    %71 = arith.mulf %70, %70 : vector<8x32xf32>
    %cst_43 = arith.constant dense<0.000000e+00> : vector<8xf32>
    %72 = vector.multi_reduction <add>, %71, %cst_43 [1] : vector<8x32xf32> to vector<8xf32>
    %73 = vector.shape_cast %72 : vector<8xf32> to vector<8x1xf32>
    %cst_44 = arith.constant 3.200000e+01 : f32
    %74 = vector.broadcast %cst_44 : f32 to vector<8x1xf32>
    %75 = arith.divf %73, %74 : vector<8x1xf32>
    %76 = vector.broadcast %68 : vector<8x1xf32> to vector<8x32xf32>
    %77 = arith.subf %64, %76 : vector<8x32xf32>
    %cst_45 = arith.constant 9.99999996E-13 : f32
    %78 = vector.broadcast %cst_45 : f32 to vector<8x1xf32>
    %79 = arith.addf %75, %78 : vector<8x1xf32>
    %80 = math.rsqrt %79 : vector<8x1xf32>
    %81 = vector.broadcast %80 : vector<8x1xf32> to vector<8x32xf32>
    %82 = arith.mulf %77, %81 : vector<8x32xf32>
    %83 = vector.broadcast %20 : vector<1x32xf32> to vector<8x32xf32>
    %84 = arith.mulf %82, %83 : vector<8x32xf32>
    %85 = vector.broadcast %22 : vector<1x32xf32> to vector<8x32xf32>
    %86 = arith.addf %84, %85 : vector<8x32xf32>
    %87 = arith.truncf %86 : vector<8x32xf32> to vector<8x32xbf16>
    %cst_46 = arith.constant dense<0.000000e+00> : vector<8x64xf32>
    %88 = tpu.matmul %87, %12, %cst_46 {dimension_numbers = #tpu.dot_dimension_numbers<[1], [0], [0], [1], [0, 0, 1, 1], [], []>} : vector<8x32xbf16>, vector<32x64xbf16>, vector<8x64xf32> -> vector<8x64xf32>
    %89 = vector.broadcast %24 : vector<1x64xf32> to vector<8x64xf32>
    %90 = arith.addf %88, %89 : vector<8x64xf32>
    %cst_47 = arith.constant 5.000000e-01 : f32
    %91 = vector.broadcast %cst_47 : f32 to vector<8x64xf32>
    %92 = arith.mulf %91, %90 : vector<8x64xf32>
    %cst_48 = arith.constant 0.636619746 : f32
    %93 = math.sqrt %cst_48 : f32
    %cst_49 = arith.constant 4.471500e-02 : f32
    %94 = vector.broadcast %cst_49 : f32 to vector<8x64xf32>
    %95 = arith.mulf %94, %90 : vector<8x64xf32>
    %96 = arith.mulf %95, %90 : vector<8x64xf32>
    %97 = arith.mulf %96, %90 : vector<8x64xf32>
    %98 = arith.addf %90, %97 : vector<8x64xf32>
    %99 = vector.broadcast %93 : f32 to vector<8x64xf32>
    %100 = arith.mulf %99, %98 : vector<8x64xf32>
    %101 = math.tanh %100 : vector<8x64xf32>
    %cst_50 = arith.constant 1.000000e+00 : f32
    %102 = vector.broadcast %cst_50 : f32 to vector<8x64xf32>
    %103 = arith.addf %102, %101 : vector<8x64xf32>
    %104 = arith.mulf %92, %103 : vector<8x64xf32>
    %105 = arith.truncf %104 : vector<8x64xf32> to vector<8x64xbf16>
    %cst_51 = arith.constant dense<0.000000e+00> : vector<8x32xf32>
    %106 = tpu.matmul %105, %14, %cst_51 {dimension_numbers = #tpu.dot_dimension_numbers<[1], [0], [0], [1], [0, 0, 1, 1], [], []>} : vector<8x64xbf16>, vector<64x32xbf16>, vector<8x32xf32> -> vector<8x32xf32>
    %107 = vector.broadcast %26 : vector<1x32xf32> to vector<8x32xf32>
    %108 = arith.addf %106, %107 : vector<8x32xf32>
    %109 = arith.addf %86, %108 : vector<8x32xf32>
    %cst_52 = arith.constant dense<0.000000e+00> : vector<8xf32>
    %110 = vector.multi_reduction <add>, %109, %cst_52 [1] : vector<8x32xf32> to vector<8xf32>
    %111 = vector.shape_cast %110 : vector<8xf32> to vector<8x1xf32>
    %cst_53 = arith.constant 3.200000e+01 : f32
    %112 = vector.broadcast %cst_53 : f32 to vector<8x1xf32>
    %113 = arith.divf %111, %112 : vector<8x1xf32>
    %114 = vector.broadcast %113 : vector<8x1xf32> to vector<8x32xf32>
    %115 = arith.subf %109, %114 : vector<8x32xf32>
    %116 = arith.mulf %115, %115 : vector<8x32xf32>
    %cst_54 = arith.constant dense<0.000000e+00> : vector<8xf32>
    %117 = vector.multi_reduction <add>, %116, %cst_54 [1] : vector<8x32xf32> to vector<8xf32>
    %118 = vector.shape_cast %117 : vector<8xf32> to vector<8x1xf32>
    %cst_55 = arith.constant 3.200000e+01 : f32
    %119 = vector.broadcast %cst_55 : f32 to vector<8x1xf32>
    %120 = arith.divf %118, %119 : vector<8x1xf32>
    %121 = vector.broadcast %113 : vector<8x1xf32> to vector<8x32xf32>
    %122 = arith.subf %109, %121 : vector<8x32xf32>
    %cst_56 = arith.constant 9.99999996E-13 : f32
    %123 = vector.broadcast %cst_56 : f32 to vector<8x1xf32>
    %124 = arith.addf %120, %123 : vector<8x1xf32>
    %125 = math.rsqrt %124 : vector<8x1xf32>
    %126 = vector.broadcast %125 : vector<8x1xf32> to vector<8x32xf32>
    %127 = arith.mulf %122, %126 : vector<8x32xf32>
    %128 = vector.broadcast %28 : vector<1x32xf32> to vector<8x32xf32>
    %129 = arith.mulf %127, %128 : vector<8x32xf32>
    %130 = vector.broadcast %30 : vector<1x32xf32> to vector<8x32xf32>
    %131 = arith.addf %129, %130 : vector<8x32xf32>
    %c1 = arith.constant 1 : index
    %c0_57 = arith.constant 0 : index
    %c0_58 = arith.constant 0 : index
    %c0_59 = arith.constant 0 : index
    %132 = vector.load %arg3[%c1, %c0_57, %c0_58, %c0_59] : memref<2x2x48x48xbf16, #tpu.memory_space<vmem>>, vector<1x2x32x48xbf16>
    %133 = vector.shape_cast %132 : vector<1x2x32x48xbf16> to vector<2x32x48xbf16>
    %c1_60 = arith.constant 1 : index
    %c0_61 = arith.constant 0 : index
    %c32_62 = arith.constant 32 : index
    %c0_63 = arith.constant 0 : index
    %134 = vector.load %arg3[%c1_60, %c0_61, %c32_62, %c0_63] : memref<2x2x48x48xbf16, #tpu.memory_space<vmem>>, vector<1x2x16x32xbf16>
    %135 = vector.shape_cast %134 : vector<1x2x16x32xbf16> to vector<2x16x32xbf16>
    %c1_64 = arith.constant 1 : index
    %c0_65 = arith.constant 0 : index
    %c0_66 = arith.constant 0 : index
    %136 = vector.load %arg4[%c1_64, %c0_65, %c0_66] : memref<2x96x64xbf16, #tpu.memory_space<vmem>>, vector<1x32x64xbf16>
    %137 = vector.shape_cast %136 : vector<1x32x64xbf16> to vector<32x64xbf16>
    %c1_67 = arith.constant 1 : index
    %c32_68 = arith.constant 32 : index
    %c0_69 = arith.constant 0 : index
    %138 = vector.load %arg4[%c1_67, %c32_68, %c0_69] : memref<2x96x64xbf16, #tpu.memory_space<vmem>>, vector<1x64x32xbf16>
    %139 = vector.shape_cast %138 : vector<1x64x32xbf16> to vector<64x32xbf16>
    %c1_70 = arith.constant 1 : index
    %c0_71 = arith.constant 0 : index
    %c0_72 = arith.constant 0 : index
    %140 = vector.load %arg5[%c1_70, %c0_71, %c0_72] : memref<3x16x128xf32, #tpu.memory_space<vmem>>, vector<1x2x48xf32>
    %141 = vector.shape_cast %140 : vector<1x2x48xf32> to vector<2x48xf32>
    %c1_73 = arith.constant 1 : index
    %c2_74 = arith.constant 2 : index
    %c0_75 = arith.constant 0 : index
    %142 = vector.load %arg5[%c1_73, %c2_74, %c0_75] : memref<3x16x128xf32, #tpu.memory_space<vmem>>, vector<1x1x32xf32>
    %143 = vector.shape_cast %142 : vector<1x1x32xf32> to vector<1x32xf32>
    %c1_76 = arith.constant 1 : index
    %c3_77 = arith.constant 3 : index
    %c0_78 = arith.constant 0 : index
    %144 = vector.load %arg5[%c1_76, %c3_77, %c0_78] : memref<3x16x128xf32, #tpu.memory_space<vmem>>, vector<1x1x32xf32>
    %145 = vector.shape_cast %144 : vector<1x1x32xf32> to vector<1x32xf32>
    %c1_79 = arith.constant 1 : index
    %c4_80 = arith.constant 4 : index
    %c0_81 = arith.constant 0 : index
    %146 = vector.load %arg5[%c1_79, %c4_80, %c0_81] : memref<3x16x128xf32, #tpu.memory_space<vmem>>, vector<1x1x32xf32>
    %147 = vector.shape_cast %146 : vector<1x1x32xf32> to vector<1x32xf32>
    %c1_82 = arith.constant 1 : index
    %c5_83 = arith.constant 5 : index
    %c0_84 = arith.constant 0 : index
    %148 = vector.load %arg5[%c1_82, %c5_83, %c0_84] : memref<3x16x128xf32, #tpu.memory_space<vmem>>, vector<1x1x64xf32>
    %149 = vector.shape_cast %148 : vector<1x1x64xf32> to vector<1x64xf32>
    %c1_85 = arith.constant 1 : index
    %c6_86 = arith.constant 6 : index
    %c0_87 = arith.constant 0 : index
    %150 = vector.load %arg5[%c1_85, %c6_86, %c0_87] : memref<3x16x128xf32, #tpu.memory_space<vmem>>, vector<1x1x32xf32>
    %151 = vector.shape_cast %150 : vector<1x1x32xf32> to vector<1x32xf32>
    %c1_88 = arith.constant 1 : index
    %c7_89 = arith.constant 7 : index
    %c0_90 = arith.constant 0 : index
    %152 = vector.load %arg5[%c1_88, %c7_89, %c0_90] : memref<3x16x128xf32, #tpu.memory_space<vmem>>, vector<1x1x32xf32>
    %153 = vector.shape_cast %152 : vector<1x1x32xf32> to vector<1x32xf32>
    %c1_91 = arith.constant 1 : index
    %c8_92 = arith.constant 8 : index
    %c0_93 = arith.constant 0 : index
    %154 = vector.load %arg5[%c1_91, %c8_92, %c0_93] : memref<3x16x128xf32, #tpu.memory_space<vmem>>, vector<1x1x32xf32>
    %155 = vector.shape_cast %154 : vector<1x1x32xf32> to vector<1x32xf32>
    %156 = arith.truncf %131 : vector<8x32xf32> to vector<8x32xbf16>
    %157 = vector.shape_cast %156 : vector<8x32xbf16> to vector<1x8x32xbf16>
    %158 = vector.shape_cast %157 : vector<1x8x32xbf16> to vector<1x8x32xbf16>
    %159 = vector.broadcast %158 : vector<1x8x32xbf16> to vector<2x8x32xbf16>
    "tpu.trace_start"() <{level = 10 : i32, message = "hsk,hkd->hsd"}> : () -> ()
    %cst_94 = arith.constant dense<0.000000e+00> : vector<2x8x48xf32>
    %160 = tpu.matmul %159, %133, %cst_94 {dimension_numbers = #tpu.dot_dimension_numbers<[2], [1], [1], [2], [0, 0, 0, 1, 1, 2], [0], [0]>} : vector<2x8x32xbf16>, vector<2x32x48xbf16>, vector<2x8x48xf32> -> vector<2x8x48xf32>
    "tpu.trace_stop"() : () -> ()
    %161 = vector.shape_cast %141 : vector<2x48xf32> to vector<2x1x48xf32>
    %162 = vector.broadcast %161 : vector<2x1x48xf32> to vector<2x8x48xf32>
    %163 = arith.addf %160, %162 : vector<2x8x48xf32>
    %164 = vector.extract_strided_slice %163 {offsets = [0, 0, 0], sizes = [2, 8, 16], strides = [1, 1, 1]} : vector<2x8x48xf32> to vector<2x8x16xf32>
    %165 = vector.extract_strided_slice %163 {offsets = [0, 0, 16], sizes = [2, 8, 16], strides = [1, 1, 1]} : vector<2x8x48xf32> to vector<2x8x16xf32>
    %166 = vector.extract_strided_slice %163 {offsets = [0, 0, 32], sizes = [2, 8, 16], strides = [1, 1, 1]} : vector<2x8x48xf32> to vector<2x8x16xf32>
    %167 = arith.truncf %164 : vector<2x8x16xf32> to vector<2x8x16xbf16>
    %168 = arith.truncf %165 : vector<2x8x16xf32> to vector<2x8x16xbf16>
    "tpu.trace_start"() <{level = 10 : i32, message = "hqd,hkd->hqk"}> : () -> ()
    %cst_95 = arith.constant dense<0.000000e+00> : vector<2x8x8xf32>
    %169 = tpu.matmul %167, %168, %cst_95 {dimension_numbers = #tpu.dot_dimension_numbers<[2], [2], [1], [1], [0, 0, 0, 1, 1, 1], [0], [0]>} : vector<2x8x16xbf16>, vector<2x8x16xbf16>, vector<2x8x8xf32> -> vector<2x8x8xf32>
    "tpu.trace_stop"() : () -> ()
    %170 = arith.addf %169, %6 : vector<2x8x8xf32>
    %cst_96 = arith.constant dense<0xFF800000> : vector<2x8xf32>
    %171 = vector.multi_reduction <maximumf>, %170, %cst_96 [2] : vector<2x8x8xf32> to vector<2x8xf32>
    %172 = vector.shape_cast %171 : vector<2x8xf32> to vector<2x8x1xf32>
    %173 = vector.broadcast %172 : vector<2x8x1xf32> to vector<2x8x8xf32>
    %174 = arith.subf %170, %173 : vector<2x8x8xf32>
    %175 = math.exp %174 : vector<2x8x8xf32>
    %cst_97 = arith.constant dense<0.000000e+00> : vector<2x8xf32>
    %176 = vector.multi_reduction <add>, %175, %cst_97 [2] : vector<2x8x8xf32> to vector<2x8xf32>
    %177 = vector.shape_cast %176 : vector<2x8xf32> to vector<2x8x1xf32>
    %178 = tpu.reciprocal %177 {approx = true} : vector<2x8x1xf32> -> vector<2x8x1xf32>
    %179 = vector.broadcast %178 : vector<2x8x1xf32> to vector<2x8x8xf32>
    %180 = arith.mulf %175, %179 : vector<2x8x8xf32>
    %181 = arith.truncf %180 : vector<2x8x8xf32> to vector<2x8x8xbf16>
    %182 = arith.truncf %166 : vector<2x8x16xf32> to vector<2x8x16xbf16>
    "tpu.trace_start"() <{level = 10 : i32, message = "hqk,hkd->hqd"}> : () -> ()
    %cst_98 = arith.constant dense<0.000000e+00> : vector<2x8x16xf32>
    %183 = tpu.matmul %181, %182, %cst_98 {dimension_numbers = #tpu.dot_dimension_numbers<[2], [1], [1], [2], [0, 0, 0, 1, 1, 2], [0], [0]>} : vector<2x8x8xbf16>, vector<2x8x16xbf16>, vector<2x8x16xf32> -> vector<2x8x16xf32>
    "tpu.trace_stop"() : () -> ()
    %184 = arith.truncf %183 : vector<2x8x16xf32> to vector<2x8x16xbf16>
    "tpu.trace_start"() <{level = 10 : i32, message = "hqd,hdk->hqk"}> : () -> ()
    %cst_99 = arith.constant dense<0.000000e+00> : vector<2x8x32xf32>
    %185 = tpu.matmul %184, %135, %cst_99 {dimension_numbers = #tpu.dot_dimension_numbers<[2], [1], [1], [2], [0, 0, 0, 1, 1, 2], [0], [0]>} : vector<2x8x16xbf16>, vector<2x16x32xbf16>, vector<2x8x32xf32> -> vector<2x8x32xf32>
    "tpu.trace_stop"() : () -> ()
    %cst_100 = arith.constant dense<0.000000e+00> : vector<8x32xf32>
    %186 = vector.multi_reduction <add>, %185, %cst_100 [0] : vector<2x8x32xf32> to vector<8x32xf32>
    %187 = vector.broadcast %143 : vector<1x32xf32> to vector<8x32xf32>
    %188 = arith.addf %186, %187 : vector<8x32xf32>
    %189 = arith.addf %131, %188 : vector<8x32xf32>
    %cst_101 = arith.constant dense<0.000000e+00> : vector<8xf32>
    %190 = vector.multi_reduction <add>, %189, %cst_101 [1] : vector<8x32xf32> to vector<8xf32>
    %191 = vector.shape_cast %190 : vector<8xf32> to vector<8x1xf32>
    %cst_102 = arith.constant 3.200000e+01 : f32
    %192 = vector.broadcast %cst_102 : f32 to vector<8x1xf32>
    %193 = arith.divf %191, %192 : vector<8x1xf32>
    %194 = vector.broadcast %193 : vector<8x1xf32> to vector<8x32xf32>
    %195 = arith.subf %189, %194 : vector<8x32xf32>
    %196 = arith.mulf %195, %195 : vector<8x32xf32>
    %cst_103 = arith.constant dense<0.000000e+00> : vector<8xf32>
    %197 = vector.multi_reduction <add>, %196, %cst_103 [1] : vector<8x32xf32> to vector<8xf32>
    %198 = vector.shape_cast %197 : vector<8xf32> to vector<8x1xf32>
    %cst_104 = arith.constant 3.200000e+01 : f32
    %199 = vector.broadcast %cst_104 : f32 to vector<8x1xf32>
    %200 = arith.divf %198, %199 : vector<8x1xf32>
    %201 = vector.broadcast %193 : vector<8x1xf32> to vector<8x32xf32>
    %202 = arith.subf %189, %201 : vector<8x32xf32>
    %cst_105 = arith.constant 9.99999996E-13 : f32
    %203 = vector.broadcast %cst_105 : f32 to vector<8x1xf32>
    %204 = arith.addf %200, %203 : vector<8x1xf32>
    %205 = math.rsqrt %204 : vector<8x1xf32>
    %206 = vector.broadcast %205 : vector<8x1xf32> to vector<8x32xf32>
    %207 = arith.mulf %202, %206 : vector<8x32xf32>
    %208 = vector.broadcast %145 : vector<1x32xf32> to vector<8x32xf32>
    %209 = arith.mulf %207, %208 : vector<8x32xf32>
    %210 = vector.broadcast %147 : vector<1x32xf32> to vector<8x32xf32>
    %211 = arith.addf %209, %210 : vector<8x32xf32>
    %212 = arith.truncf %211 : vector<8x32xf32> to vector<8x32xbf16>
    %cst_106 = arith.constant dense<0.000000e+00> : vector<8x64xf32>
    %213 = tpu.matmul %212, %137, %cst_106 {dimension_numbers = #tpu.dot_dimension_numbers<[1], [0], [0], [1], [0, 0, 1, 1], [], []>} : vector<8x32xbf16>, vector<32x64xbf16>, vector<8x64xf32> -> vector<8x64xf32>
    %214 = vector.broadcast %149 : vector<1x64xf32> to vector<8x64xf32>
    %215 = arith.addf %213, %214 : vector<8x64xf32>
    %cst_107 = arith.constant 5.000000e-01 : f32
    %216 = vector.broadcast %cst_107 : f32 to vector<8x64xf32>
    %217 = arith.mulf %216, %215 : vector<8x64xf32>
    %cst_108 = arith.constant 0.636619746 : f32
    %218 = math.sqrt %cst_108 : f32
    %cst_109 = arith.constant 4.471500e-02 : f32
    %219 = vector.broadcast %cst_109 : f32 to vector<8x64xf32>
    %220 = arith.mulf %219, %215 : vector<8x64xf32>
    %221 = arith.mulf %220, %215 : vector<8x64xf32>
    %222 = arith.mulf %221, %215 : vector<8x64xf32>
    %223 = arith.addf %215, %222 : vector<8x64xf32>
    %224 = vector.broadcast %218 : f32 to vector<8x64xf32>
    %225 = arith.mulf %224, %223 : vector<8x64xf32>
    %226 = math.tanh %225 : vector<8x64xf32>
    %cst_110 = arith.constant 1.000000e+00 : f32
    %227 = vector.broadcast %cst_110 : f32 to vector<8x64xf32>
    %228 = arith.addf %227, %226 : vector<8x64xf32>
    %229 = arith.mulf %217, %228 : vector<8x64xf32>
    %230 = arith.truncf %229 : vector<8x64xf32> to vector<8x64xbf16>
    %cst_111 = arith.constant dense<0.000000e+00> : vector<8x32xf32>
    %231 = tpu.matmul %230, %139, %cst_111 {dimension_numbers = #tpu.dot_dimension_numbers<[1], [0], [0], [1], [0, 0, 1, 1], [], []>} : vector<8x64xbf16>, vector<64x32xbf16>, vector<8x32xf32> -> vector<8x32xf32>
    %232 = vector.broadcast %151 : vector<1x32xf32> to vector<8x32xf32>
    %233 = arith.addf %231, %232 : vector<8x32xf32>
    %234 = arith.addf %211, %233 : vector<8x32xf32>
    %cst_112 = arith.constant dense<0.000000e+00> : vector<8xf32>
    %235 = vector.multi_reduction <add>, %234, %cst_112 [1] : vector<8x32xf32> to vector<8xf32>
    %236 = vector.shape_cast %235 : vector<8xf32> to vector<8x1xf32>
    %cst_113 = arith.constant 3.200000e+01 : f32
    %237 = vector.broadcast %cst_113 : f32 to vector<8x1xf32>
    %238 = arith.divf %236, %237 : vector<8x1xf32>
    %239 = vector.broadcast %238 : vector<8x1xf32> to vector<8x32xf32>
    %240 = arith.subf %234, %239 : vector<8x32xf32>
    %241 = arith.mulf %240, %240 : vector<8x32xf32>
    %cst_114 = arith.constant dense<0.000000e+00> : vector<8xf32>
    %242 = vector.multi_reduction <add>, %241, %cst_114 [1] : vector<8x32xf32> to vector<8xf32>
    %243 = vector.shape_cast %242 : vector<8xf32> to vector<8x1xf32>
    %cst_115 = arith.constant 3.200000e+01 : f32
    %244 = vector.broadcast %cst_115 : f32 to vector<8x1xf32>
    %245 = arith.divf %243, %244 : vector<8x1xf32>
    %246 = vector.broadcast %238 : vector<8x1xf32> to vector<8x32xf32>
    %247 = arith.subf %234, %246 : vector<8x32xf32>
    %cst_116 = arith.constant 9.99999996E-13 : f32
    %248 = vector.broadcast %cst_116 : f32 to vector<8x1xf32>
    %249 = arith.addf %245, %248 : vector<8x1xf32>
    %250 = math.rsqrt %249 : vector<8x1xf32>
    %251 = vector.broadcast %250 : vector<8x1xf32> to vector<8x32xf32>
    %252 = arith.mulf %247, %251 : vector<8x32xf32>
    %253 = vector.broadcast %153 : vector<1x32xf32> to vector<8x32xf32>
    %254 = arith.mulf %252, %253 : vector<8x32xf32>
    %255 = vector.broadcast %155 : vector<1x32xf32> to vector<8x32xf32>
    %256 = arith.addf %254, %255 : vector<8x32xf32>
    %257 = vector.extract_strided_slice %256 {offsets = [0, 0], sizes = [1, 32], strides = [1, 1]} : vector<8x32xf32> to vector<1x32xf32>
    %c2_117 = arith.constant 2 : index
    %c0_118 = arith.constant 0 : index
    %c0_119 = arith.constant 0 : index
    %258 = vector.load %arg5[%c2_117, %c0_118, %c0_119] : memref<3x16x128xf32, #tpu.memory_space<vmem>>, vector<1x1x32xf32>
    %259 = vector.shape_cast %258 : vector<1x1x32xf32> to vector<1x32xf32>
    %c2_120 = arith.constant 2 : index
    %c1_121 = arith.constant 1 : index
    %c0_122 = arith.constant 0 : index
    %260 = vector.load %arg5[%c2_120, %c1_121, %c0_122] : memref<3x16x128xf32, #tpu.memory_space<vmem>>, vector<1x1x128xf32>
    %261 = vector.shape_cast %260 : vector<1x1x128xf32> to vector<1x128xf32>
    %c0_123 = arith.constant 0 : index
    %c0_124 = arith.constant 0 : index
    %262 = vector.load %arg6[%c0_123, %c0_124] : memref<32x160xbf16, #tpu.memory_space<vmem>>, vector<32x128xbf16>
    %c0_125 = arith.constant 0 : index
    %c128 = arith.constant 128 : index
    %263 = vector.load %arg6[%c0_125, %c128] : memref<32x160xbf16, #tpu.memory_space<vmem>>, vector<32x32xbf16>
    %264 = arith.truncf %257 : vector<1x32xf32> to vector<1x32xbf16>
    %cst_126 = arith.constant dense<0.000000e+00> : vector<1x32xf32>
    %265 = tpu.matmul %264, %263, %cst_126 {dimension_numbers = #tpu.dot_dimension_numbers<[1], [0], [0], [1], [0, 0, 1, 1], [], []>} : vector<1x32xbf16>, vector<32x32xbf16>, vector<1x32xf32> -> vector<1x32xf32>
    %266 = arith.addf %265, %259 : vector<1x32xf32>
    %267 = math.tanh %266 : vector<1x32xf32>
    %268 = arith.truncf %267 : vector<1x32xf32> to vector<1x32xbf16>
    %cst_127 = arith.constant dense<0.000000e+00> : vector<1x128xf32>
    %269 = tpu.matmul %268, %262, %cst_127 {dimension_numbers = #tpu.dot_dimension_numbers<[1], [0], [0], [1], [0, 0, 1, 1], [], []>} : vector<1x32xbf16>, vector<32x128xbf16>, vector<1x128xf32> -> vector<1x128xf32>
    %270 = arith.addf %269, %261 : vector<1x128xf32>
    %271 = vector.shape_cast %270 : vector<1x128xf32> to vector<1x128xf32>
    %272 = vector.broadcast %271 : vector<1x128xf32> to vector<8x128xf32>
    %c0_128 = arith.constant 0 : index
    %c0_129 = arith.constant 0 : index
    %c0_130 = arith.constant 0 : index
    %273 = vector.load %arg7[%c0_128, %c0_129, %c0_130] : memref<1x8x128xf32, #tpu.memory_space<vmem>>, vector<1x8x128xf32>
    %274 = vector.shape_cast %273 : vector<1x8x128xf32> to vector<8x128xf32>
    %275 = vector.shape_cast %272 : vector<8x128xf32> to vector<1x8x128xf32>
    tpu.vector_store %arg7[%c0_128, %c0_129, %c0_130], %275 {strides = array<i32>} : memref<1x8x128xf32, #tpu.memory_space<vmem>>, vector<1x8x128xf32>,
    return
  }
  func.func @transform_0(%arg0: i32) -> (i32, i32, i32) {
    %c0_i32 = arith.constant 0 : i32
    %c0_i32_0 = arith.constant 0 : i32
    %c0_i32_1 = arith.constant 0 : i32
    return %arg0, %c0_i32, %c0_i32_0 : i32, i32, i32
  }
  func.func @transform_1(%arg0: i32) -> (i32, i32, i32) {
    %c0_i32 = arith.constant 0 : i32
    %c0_i32_0 = arith.constant 0 : i32
    %c0_i32_1 = arith.constant 0 : i32
    return %arg0, %c0_i32, %c0_i32_0 : i32, i32, i32
  }
  func.func @transform_2(%arg0: i32) -> (i32, i32, i32, i32) {
    %c0_i32 = arith.constant 0 : i32
    %c0_i32_0 = arith.constant 0 : i32
    %c0_i32_1 = arith.constant 0 : i32
    %c0_i32_2 = arith.constant 0 : i32
    %c0_i32_3 = arith.constant 0 : i32
    return %c0_i32, %c0_i32_0, %c0_i32_1, %c0_i32_2 : i32, i32, i32, i32
  }
  func.func @transform_3(%arg0: i32) -> (i32, i32, i32) {
    %c0_i32 = arith.constant 0 : i32
    %c0_i32_0 = arith.constant 0 : i32
    %c0_i32_1 = arith.constant 0 : i32
    %c0_i32_2 = arith.constant 0 : i32
    return %c0_i32, %c0_i32_0, %c0_i32_1 : i32, i32, i32
  }
  func.func @transform_4(%arg0: i32) -> (i32, i32, i32) {
    %c0_i32 = arith.constant 0 : i32
    %c0_i32_0 = arith.constant 0 : i32
    %c0_i32_1 = arith.constant 0 : i32
    %c0_i32_2 = arith.constant 0 : i32
    return %c0_i32, %c0_i32_0, %c0_i32_1 : i32, i32, i32
  }
  func.func @transform_5(%arg0: i32) -> (i32, i32) {
    %c0_i32 = arith.constant 0 : i32
    %c0_i32_0 = arith.constant 0 : i32
    %c0_i32_1 = arith.constant 0 : i32
    return %c0_i32, %c0_i32_0 : i32, i32
  }
  func.func @transform_6(%arg0: i32) -> (i32, i32, i32) {
    %c0_i32 = arith.constant 0 : i32
    %c0_i32_0 = arith.constant 0 : i32
    %c0_i32_1 = arith.constant 0 : i32
    return %arg0, %c0_i32, %c0_i32_0 : i32, i32, i32
  }
}

</mosaic_0001>

<bundles_post_ra>
// kernel: bert_classifier_forward.1
= control target key start
LH: loop header
LB: loop body
LE: loop exit
PB: predicated region body
PF: predicated region fallthrough
CT: control target
= control target key end

     0   :  { %s2297_s21 = smov 0   ;;  %s2630_s0 = inlined_call_operand.vmem [shape: f32[2,8,32], index: 0, kind: input, shape index: {}]   ;;  %s2631_s1 = inlined_call_operand.vmem [shape: f32[2,1,8], index: 1, kind: input, shape index: {}]   ;;  %s2632_s2 = inlined_call_operand.vmem [shape: bf16[2,2,48,48], index: 2, kind: input, shape index: {}]   ;;  %s2633_s3 = inlined_call_operand.vmem [shape: bf16[2,96,64], index: 3, kind: input, shape index: {}]   ;;  %s2634_s4 = inlined_call_operand.vmem [shape: f32[3,16,128], index: 4, kind: input, shape index: {}]   ;;  %s2635_s5 = inlined_call_operand.vmem [shape: bf16[32,160], index: 5, kind: input, shape index: {}]   ;;  %s2636_s6 = inlined_call_operand.vmem [shape: f32[2,8,128], index: 6, kind: output, shape index: {}]  }
   0x1 LB: > { %s1850_s22 = sadd.s32 4294967295, %s2255_s21   ;;  %p1854_p0 = scmp.ge.s32.totalorder %s2255_s21, 1  ;;  %s2255_s21 = sphi %s2297_s21, %s16_s21  }
   0x2   : > { %p219_p1 = scmp.lt.s32.totalorder %s2255_s21, 3 }
   0x4   : > { %p220_p2 = pnand %p1854_p0, %p219_p1 }
   0x5   : > { %p250_p3 = scmp.lt.s32.totalorder (!%p220_p2), %s1850_s22, 1  ;;  %s2260_s13 = smov (!%p220_p2), 112  }
   0x6   : > { %223 = sbr.rel (%p220_p2) target bundleno = 4974 (0x136e), region = 44  ;;  %s2261_s17 = smov (!%p220_p2), 96  }
   0xb   : > { %v2191_v0 = vld [vmem:[%s2632_s2 + $0x8] sm:$0xff]   ;;  %v2257_v1 = vmov 0.0   ;;  %v2192_v2 = vld [vmem:[%s2632_s2 + $0x20] sm:$0xff]   ;;  %vm2258_vm0 = vmmov 0   ;;  %v2194_v4 = vld [vmem:[%s2632_s2 + $0x18] sm:$0xff]   ;;  %s2638_s22 = smov (!%p250_p3, %s1850_s22), 1  ;;  %v315_v9 = vlaneseq }
   0xc   : > { %2018 = vmatprep.subr.bf16.mxu0 %v2257_v1  ;;  %2026 = vmatprep.subr.bf16.mxu1 %v2257_v1  ;;  %v2193_v3 = vld [vmem:[%s2632_s2] sm:$0xff]   ;;  %s1855_s7 = sshll.u32 %s2638_s22, 3  ;;  %vm348_vm1 = vcmask 261120   ;;  %v2259_v7 = vmov 1966171168   ;;  %vm449_vm2 = vcmask 130048   ;;  %s256_s16 = scalar_lea.vmem %s2631_s1, %s2638_s22 }
   0xd   : > { %2019 = vmatpush3.bf16.msra.mxu0 %v2191_v0  ;;  %2022 = vmatprep.mubr.msk.bf16.mxu0 %vm2258_vm0, %v2257_v1  ;;  %s253_s10 = scalar_lea.vmem %s2630_s0, %s1855_s7  ;;  %v313_v8 = vunpack.c.l.s4 %v2259_v7  ;;  %v316_v11 = vshrl.u32 %v315_v9, 7  ;;  %v1858_v12 = vld.sshfl [vmem:[%s2634_s4] sm:$0x11 pattern:$0x75316420]  ;;  %vm545_vm3 = vcmask 64512   ;;  %s260_s20 = scalar_lea.vmem %s2636_s6, %s1855_s7 }
   0xe   : > { %2027 = vmatpush3.bf16.msra.mxu1 %v2192_v2  ;;  %2020 = vmatprep.subr.bf16.mxu0 %v2257_v1  ;;  %v2334_v5 = vld [vmem:[%s253_s10] sm:$0xff]  ;;  %v311_v14 = vcombine.high %v1858_v12, %v1858_v12  ;;  %vm575_vm4 = vcmask 1043456   ;;  %v2195_v9 = vld [vmem:[%s2632_s2 + $0x10] sm:$0xff]   ;;  %vm898_vm5 = vcmask 523264  }
   0xf   : > { %2028 = vmatprep.subr.bf16.mxu1 %v2257_v1  ;;  %2030 = vmatprep.mubr.msk.bf16.mxu1 %vm2258_vm0, %v2257_v1  ;;  %v302_v6 = vpack.c.bf16 %v2334_v5, %v2334_v5  ;;  %v314_v10 = vunpack.c.0.s8 %v313_v8  ;;  %v2351_v16 = vsub.s32 0, %v316_v11  ;;  %v2372_v36 = vld [vmem:[%s256_s16] ss:$0 sm:$0xff] }
  0x11   : > { %2021 = vmatpush3.bf16.msra.mxu0 %v2193_v3  ;;  %v2348_v13 = vsub.s32 %v314_v10, %v316_v11  ;;  %v2196_v10 = vld [vmem:[%s2632_s2 + $0x28] sm:$0xff]  }
  0x12   : > { %2029 = vmatpush3.bf16.msra.mxu1 %v2194_v4  ;;  %2034 = vmatprep.subr.bf16.mxu0 %v2257_v1 }
  0x13   : > { %2040 = vmatprep.subr.bf16.mxu1 %v2257_v1  ;;  %v318_v15 = vrot.slane %v1858_v12, %v2348_v13  ;;  %v325_v17 = vrot.slane %v311_v14, %v2348_v13 }
  0x14   : > { %2023 = vmatmul.mubr.msk.bf16.vlgmr.msra.gmra.mxu0 %vm348_vm1, %v302_v6 }
  0x15   : > { %2031 = vmatmul.mubr.msk.bf16.vlgmr.msra.gmra.mxu1 %vm348_vm1, %v302_v6  ;;  %2036 = vmatprep.mubr.msk.bf16.mxu0 %vm2258_vm0, %v2257_v1  ;;  %v329_v18 = vrot.slane %v318_v15, %v2351_v16  ;;  %v333_v19 = vrot.slane %v325_v17, %v2351_v16 }
  0x16   : > { %2042 = vmatprep.mubr.msk.bf16.mxu1 %vm2258_vm0, %v2257_v1 }
  0xd4   : > { %v386_v20 = vpop.f32.mrf.mxu0 }
  0xd5   : > { %v438_v21 = vpop.f32.mrf.mxu1  ;;  %v387_v22 = vadd.f32 %v386_v20, %v329_v18 }
  0xd6   : > { %v439_v23 = vadd.f32 %v438_v21, %v333_v19  ;;  %v2024_v24 = vpop.f32.mrf.mxu0 }
  0xd7   : > { %v2032_v25 = vpop.f32.mrf.mxu1  ;;  %v444_v26 = vpack.c.bf16 %v387_v22, %v387_v22 }
  0xd8   : > { %v389_v27 = vpop.f32.mrf.mxu0  ;;  %v445_v29 = vpack.c.bf16 %v439_v23, %v439_v23 }
  0xd9   : > { %v441_v28 = vpop.f32.mrf.mxu1  ;;  %447 = vrot.lane.b32.xlu0 %v444_v26, %s2260_s13 }
  0xda   : > { %v2025_v30 = vpop.f32.mrf.mxu0  ;;  %v1873_v28 = vld [vmem:[%s2634_s4 + $0x2] ss:$0 sm:$0xff] }
  0xdb   : > { %v2033_v31 = vpop.f32.mrf.mxu1 }
  0xdd   : > { %497 = vrot.lane.b32.xlu0 %v445_v29, %s2260_s13 }
 0x14b   : > { %v448_v32 = vpop.permute.xlu0 %447 }
 0x14c   : > { %v454_v33 = vsel %vm449_vm2, %v448_v32, 0 }
 0x14d   : > { %2035 = vmatpush3.bf16.xpose.msra.mxu0 %v454_v33 }
 0x14e   : > { %2046 = vmatprep.subr.bf16.mxu0 %v2257_v1 }
 0x14f   : > { %v498_v34 = vpop.permute.xlu0 %497 }
 0x150   : > { %v503_v35 = vsel %vm449_vm2, %v498_v34, 0 }
 0x151   : > { %2041 = vmatpush3.bf16.xpose.msra.mxu1 %v503_v35 }
 0x152   : > { %2052 = vmatprep.subr.bf16.mxu1 %v2257_v1 }
 0x154   : > { %2037 = vmatmul.mubr.msk.bf16.vlgmr.msra.gmra.mxu0 %vm449_vm2, %v444_v26 }
 0x155   : > { %2048 = vmatprep.mubr.msk.bf16.mxu0 %vm2258_vm0, %v2257_v1 }
 0x158   : > { %2043 = vmatmul.mubr.msk.bf16.vlgmr.msra.gmra.mxu1 %vm449_vm2, %v445_v29 }
 0x159   : > { %2054 = vmatprep.mubr.msk.bf16.mxu1 %vm2258_vm0, %v2257_v1 }
 0x214   : > { %v490_v37 = vpop.f32.mrf.mxu0 }
 0x215   : > { %v491_v38 = vadd.f32 %v2372_v36, %v490_v37 }
 0x216   : > { %v2038_v39 = vpop.f32.mrf.mxu0 }
 0x217   : > { %v546_v40 = vsel %vm545_vm3, %v491_v38, -inf }
 0x218   : > { %v539_v41 = vpop.f32.mrf.mxu1  ;;  %547 = vmax.xlane.f32.xlu1 %v546_v40  ;;  %v493_v42 = vpop.f32.mrf.mxu0 }
 0x219   : > { %v540_v43 = vadd.f32 %v2372_v36, %v539_v41 }
 0x21a   : > { %v2039_v44 = vpop.f32.mrf.mxu0  ;;  %v2044_v45 = vpop.f32.mrf.mxu1 }
 0x21b   : > { %v549_v46 = vsel %vm545_vm3, %v540_v43, -inf  ;;  %v2197_v44 = vld [vmem:[%s2633_s3 + $0x8] sm:$0xff]   ;;  %v2198_v45 = vld [vmem:[%s2633_s3] sm:$0xff]  }
 0x21c   : > { %v542_v47 = vpop.f32.mrf.mxu1  ;;  %550 = vmax.xlane.f32.xlu1 %v549_v46 }
 0x21e   : > { %v2045_v48 = vpop.f32.mrf.mxu1 }
 0x22d   : > { %570 = vrot.lane.b32.xlu1 %v444_v26, %s2261_s17 }
 0x2a1   : > { %v548_v49 = vpop.xlane.xlu1 %547 }
 0x2a2   : > { %v552_v50 = vsub.f32 %v491_v38, %v548_v49  ;;  %v1874_v49 = vld [vmem:[%s2634_s4 + $0x3] ss:$0 sm:$0xff] }
 0x2a4   : > { %v554_v51 = vmul.f32 1.442695, %v552_v50 }
 0x2a5   : > { %v551_v52 = vpop.xlane.xlu1 %550 }
 0x2a6   : > { %2219 = vpow2.f32 %v554_v51  ;;  %v553_v53 = vsub.f32 %v540_v43, %v551_v52  ;;  %v1875_v51 = vld [vmem:[%s2634_s4 + $0x4] ss:$0 sm:$0xff] }
 0x2a8   : > { %v556_v54 = vmul.f32 1.442695, %v553_v53 }
 0x2a9   : > { %v571_v55 = vpop.permute.xlu1 %570 }
 0x2aa   : > { %2221 = vpow2.f32 %v556_v54  ;;  %v577_v56 = vsel %vm575_vm4, %v571_v55, 0  ;;  %v2199_v55 = vld [vmem:[%s2633_s3 + $0x28] sm:$0xff]  }
 0x2ab   : > { %2047 = vmatpush3.bf16.msra.mxu0 %v577_v56  ;;  %v2200_v56 = vld [vmem:[%s2633_s3 + $0x20] sm:$0xff]  }
 0x2ac   : > { %2058 = vmatprep.subr.bf16.mxu0 %v2257_v1 }
 0x2b3   : > { %v2220_v57 = vpop.eup %2219 }
 0x2b4   : > { %v558_v58 = vsel %vm545_vm3, %v2220_v57, 0.0 }
 0x2b5   : > { %559 = vadd.xlane.f32.xlu0 %v558_v58  ;;  %v2202_v58 = vld [vmem:[%s2633_s3 + $0x10] sm:$0xff]  }
 0x2b7   : > { %v2222_v59 = vpop.eup %2221 }
 0x2b8   : > { %v561_v60 = vsel %vm545_vm3, %v2222_v59, 0.0 }
 0x2b9   : > { %562 = vadd.xlane.f32.xlu1 %v561_v60 }
 0x2ca   : > { %619 = vrot.lane.b32.xlu1 %v445_v29, %s2261_s17 }
 0x33e   : > { %v560_v61 = vpop.xlane.xlu0 %559 }
 0x33f   : > { %2223 = vrcp.f32 %v560_v61 }
 0x342   : > { %v563_v62 = vpop.xlane.xlu1 %562 }
 0x343   : > { %2225 = vrcp.f32 %v563_v62 }
 0x346   : > { %v620_v63 = vpop.permute.xlu1 %619 }
 0x347   : > { %v625_v0 = vsel %vm575_vm4, %v620_v63, 0 }
 0x348   : > { %2053 = vmatpush3.bf16.msra.mxu1 %v625_v0 }
 0x349   : > { %2064 = vmatprep.subr.bf16.mxu1 %v2257_v1 }
 0x34c   : > { %v2224_v2 = vpop.eup %2223 }
 0x34d   : > { %v566_v3 = vmul.f32 %v2224_v2, %v2220_v57  ;;  %v2201_v57 = vld [vmem:[%s2633_s3 + $0x18] sm:$0xff]  }
 0x34f   : > { %v568_v4 = vpack.c.bf16 %v566_v3, %v566_v3 }
 0x350   : > { %v2226_v6 = vpop.eup %2225 }
 0x351   : > { %2049 = vmatmul.mubr.msk.bf16.vlgmr.msra.gmra.mxu0 %vm545_vm3, %v568_v4  ;;  %v567_v7 = vmul.f32 %v2226_v6, %v2222_v59  ;;  %v1876_v59 = vld [vmem:[%s2634_s4 + $0x5] ss:$0 sm:$0xff] }
 0x352   : > { %2060 = vmatprep.mubr.msk.bf16.mxu0 %vm2258_vm0, %v2257_v1  ;;  %2059 = vmatpush3.bf16.msra.mxu0 %v2195_v9 }
 0x353   : > { %v569_v8 = vpack.c.bf16 %v567_v7, %v567_v7  ;;  %2070 = vmatprep.subr.bf16.mxu0 %v2257_v1 }
 0x355   : > { %2055 = vmatmul.mubr.msk.bf16.vlgmr.msra.gmra.mxu1 %vm545_vm3, %v569_v8 }
 0x356   : > { %2066 = vmatprep.mubr.msk.bf16.mxu1 %vm2258_vm0, %v2257_v1  ;;  %2065 = vmatpush3.bf16.msra.mxu1 %v2196_v10 }
 0x357   : > { %2078 = vmatprep.subr.bf16.mxu1 %v2257_v1 }
 0x411   : > { %v613_v11 = vpop.f32.mrf.mxu0 }
 0x412   : > { %v667_v12 = vpack.c.bf16 %v613_v11, %v613_v11 }
 0x413   : > { %v2050_v14 = vpop.f32.mrf.mxu0 }
 0x414   : > { %2061 = vmatmul.mubr.msk.bf16.vlgmr.msra.gmra.mxu0 %vm449_vm2, %v667_v12  ;;  %v1880_v14 = vld [vmem:[%s2634_s4 + $0x6] ss:$0 sm:$0xff] }
 0x415   : > { %v616_v15 = vpop.f32.mrf.mxu0  ;;  %v661_v17 = vpop.f32.mrf.mxu1  ;;  %2074 = vmatprep.mubr.msk.bf16.mxu0 %vm2258_vm0, %v2257_v1  ;;  %2071 = vmatpush3.bf16.msra.mxu0 %v2197_v44 }
 0x416   : > { %v668_v18 = vpack.c.bf16 %v661_v17, %v661_v17  ;;  %2072 = vmatprep.subr.bf16.mxu0 %v2257_v1 }
 0x417   : > { %v2051_v19 = vpop.f32.mrf.mxu0  ;;  %v2056_v20 = vpop.f32.mrf.mxu1 }
 0x418   : > { %2067 = vmatmul.mubr.msk.bf16.vlgmr.msra.gmra.mxu1 %vm449_vm2, %v668_v18 }
 0x419   : > { %v664_v21 = vpop.f32.mrf.mxu1  ;;  %2086 = vmatprep.mubr.msk.bf16.mxu1 %vm2258_vm0, %v2257_v1  ;;  %2073 = vmatpush3.bf16.msra.mxu0 %v2198_v45 }
 0x41a   : > { %2090 = vmatprep.subr.bf16.mxu0 %v2257_v1  ;;  %2079 = vmatpush3.bf16.msra.mxu1 %v2199_v55 }
 0x41b   : > { %v2057_v22 = vpop.f32.mrf.mxu1  ;;  %2080 = vmatprep.subr.bf16.mxu1 %v2257_v1 }
 0x41e   : > { %2081 = vmatpush3.bf16.msra.mxu1 %v2200_v56 }
 0x41f   : > { %2082 = vmatprep.subr.bf16.mxu1 %v2257_v1 }
 0x422   : > { %2083 = vmatpush3.bf16.msra.mxu1 %v2201_v57 }
 0x423   : > { %2084 = vmatprep.subr.bf16.mxu1 %v2257_v1 }
 0x426   : > { %2085 = vmatpush3.bf16.msra.mxu1 %v2202_v58 }
 0x427   : > { %2106 = vmatprep.subr.bf16.mxu1 %v2257_v1 }
 0x4d4   : > { %v712_v23 = vpop.f32.mrf.mxu0 }
 0x4d5   : > { %v767_v27 = vsel %vm348_vm1, %v712_v23, 0.0 }
 0x4d6   : > { %v2062_v24 = vpop.f32.mrf.mxu0 }
 0x4d8   : > { %v715_v25 = vpop.f32.mrf.mxu0  ;;  %v761_v26 = vpop.f32.mrf.mxu1 }
 0x4d9   : > { %v768_v29 = vsel %vm348_vm1, %v761_v26, 0.0 }
 0x4da   : > { %v769_v30 = vadd.f32 %v768_v29, %v767_v27  ;;  %v2063_v31 = vpop.f32.mrf.mxu0  ;;  %v2068_v32 = vpop.f32.mrf.mxu1  ;;  %v2204_v29 = vld [vmem:[%s2632_s2 + $0x30] sm:$0xff]  }
 0x4dc   : > { %v774_v33 = vadd.f32 %v1873_v28, %v769_v30  ;;  %v764_v34 = vpop.f32.mrf.mxu1  ;;  %v2203_v28 = vld [vmem:[%s2632_s2 + $0x38] sm:$0xff]  }
 0x4dd   : > { %v1886_v34 = vld [vmem:[%s2634_s4 + $0x7] ss:$0 sm:$0xff] }
 0x4de   : > { %v2069_v35 = vpop.f32.mrf.mxu1  ;;  %v775_v37 = vadd.f32 %v774_v33, %v2334_v5 }
 0x4e0   : > { %v776_v38 = vsel %vm348_vm1, %v775_v37, 0.0 }
 0x4e1   : > { %777 = vadd.xlane.f32.xlu1 %v776_v38 }
 0x56a   : > { %v778_v39 = vpop.xlane.xlu1 %777 }
 0x56b   : > { %v780_v40 = vmul.f32 0.03125, %v778_v39 }
 0x56d   : > { %v781_v41 = vsub.f32 %v775_v37, %v780_v40  ;;  %v1887_v37 = vld [vmem:[%s2634_s4 + $0x8] ss:$0 sm:$0xff]  ;;  %v2205_v40 = vld [vmem:[%s2632_s2 + $0x50] sm:$0xff]  }
 0x56f   : > { %v782_v42 = vmul.f32 %v781_v41, %v781_v41 }
 0x571   : > { %v783_v43 = vsel %vm348_vm1, %v782_v42, 0.0  ;;  %v2206_v42 = vld [vmem:[%s2632_s2 + $0x48] sm:$0xff]  }
 0x572   : > { %784 = vadd.xlane.f32.xlu0 %v783_v43  ;;  %v1920_v43 = vld.sshfl [vmem:[%s2634_s4 + $0x10] sm:$0x11 pattern:$0x75316420] }
 0x573   : > { %v1017_v44 = vrot.slane %v1920_v43, %v2348_v13 }
 0x575   : > { %v1028_v45 = vrot.slane %v1017_v44, %v2351_v16 }
 0x5fb   : > { %v785_v5 = vpop.xlane.xlu0 %784 }
 0x5fc   : > { %v786_v46 = vmul.f32 0.03125, %v785_v5  ;;  %v1010_v5 = vcombine.high %v1920_v43, %v1920_v43 }
 0x5fe   : > { %v787_v47 = vadd.f32 1e-12, %v786_v46 }
 0x600   : > { %2227 = vrsqrt.f32 %v787_v47 }
 0x60d   : > { %v2228_v48 = vpop.eup %2227 }
 0x60e   : > { %v789_v50 = vmul.f32 %v2228_v48, %v781_v41  ;;  %v1024_v48 = vrot.slane %v1010_v5, %v2348_v13 }
 0x610   : > { %v794_v52 = vmul.f32 %v1874_v49, %v789_v50 }
 0x612   : > { %v799_v53 = vadd.f32 %v1875_v51, %v794_v52  ;;  %v1032_v52 = vrot.slane %v1024_v48, %v2351_v16 }
 0x614   : > { %v800_v54 = vpack.c.bf16 %v799_v53, %v799_v53 }
 0x616   : > { %2075 = vmatmul.mubr.msk.bf16.vlgmr.msra.gmra.mxu0 %vm348_vm1, %v800_v54 }
 0x617   : > { %2094 = vmatprep.mubr.msk.bf16.mxu0 %vm2258_vm0, %v2257_v1  ;;  %2091 = vmatpush3.bf16.msra.mxu0 %v2203_v28 }
 0x618   : > { %2092 = vmatprep.subr.bf16.mxu0 %v2257_v1 }
 0x61b   : > { %2093 = vmatpush3.bf16.msra.mxu0 %v2204_v29 }
 0x61c   : > { %2098 = vmatprep.subr.bf16.mxu0 %v2257_v1 }
 0x6d6   : > { %v854_v60 = vpop.f32.mrf.mxu0 }
 0x6d7   : > { %v855_v61 = vadd.f32 %v1876_v59, %v854_v60 }
 0x6d8   : > { %v2076_v62 = vpop.f32.mrf.mxu0 }
 0x6d9   : > { %v861_v63 = vmul.f32 0.044715, %v855_v61  ;;  %v860_v9 = vmul.f32 0.5, %v855_v61 }
 0x6da   : > { %v857_v0 = vpop.f32.mrf.mxu0 }
 0x6db   : > { %v862_v2 = vmul.f32 %v861_v63, %v855_v61 }
 0x6dc   : > { %v2077_v3 = vpop.f32.mrf.mxu0 }
 0x6dd   : > { %v863_v4 = vmul.f32 %v862_v2, %v855_v61 }
 0x6df   : > { %v864_v6 = vadd.f32 %v863_v4, %v855_v61 }
 0x6e1   : > { %v865_v7 = vmul.f32 0.7978845, %v864_v6 }
 0x6e3   : > { %2229 = vtanh.f32 %v865_v7 }
 0x6f0   : > { %v2230_v8 = vpop.eup %2229 }
 0x6f1   : > { %v867_v10 = vadd.f32 1.0, %v2230_v8 }
 0x6f3   : > { %v868_v11 = vmul.f32 %v867_v10, %v860_v9 }
 0x6f5   : > { %v869_v12 = vpack.c.bf16 %v868_v11, %v868_v11 }
 0x6f7   : > { %2087 = vmatmul.mubr.msk.bf16.vlgmr.msra.gmra.mxu1 %vm898_vm5, %v869_v12 }
 0x6f8   : > { %2108 = vmatprep.mubr.msk.bf16.mxu1 %vm2258_vm0, %v2257_v1 }
 0x7b7   : > { %v936_v15 = vpop.f32.mrf.mxu1 }
 0x7b8   : > { %v937_v17 = vadd.f32 %v1880_v14, %v936_v15 }
 0x7b9   : > { %v2088_v18 = vpop.f32.mrf.mxu1 }
 0x7ba   : > { %v942_v19 = vadd.f32 %v937_v17, %v799_v53 }
 0x7bb   : > { %v939_v20 = vpop.f32.mrf.mxu1 }
 0x7bc   : > { %v943_v21 = vsel %vm348_vm1, %v942_v19, 0.0 }
 0x7bd   : > { %944 = vadd.xlane.f32.xlu0 %v943_v21  ;;  %v2089_v22 = vpop.f32.mrf.mxu1 }
 0x846   : > { %v945_v23 = vpop.xlane.xlu0 %944 }
 0x847   : > { %v946_v24 = vmul.f32 0.03125, %v945_v23 }
 0x849   : > { %v947_v25 = vsub.f32 %v942_v19, %v946_v24 }
 0x84b   : > { %v948_v26 = vmul.f32 %v947_v25, %v947_v25 }
 0x84d   : > { %v949_v27 = vsel %vm348_vm1, %v948_v26, 0.0 }
 0x84e   : > { %950 = vadd.xlane.f32.xlu0 %v949_v27 }
 0x8d7   : > { %v951_v30 = vpop.xlane.xlu0 %950 }
 0x8d8   : > { %v952_v31 = vmul.f32 0.03125, %v951_v30 }
 0x8da   : > { %v953_v32 = vadd.f32 1e-12, %v952_v31 }
 0x8dc   : > { %2231 = vrsqrt.f32 %v953_v32 }
 0x8e9   : > { %v2232_v33 = vpop.eup %2231 }
 0x8ea   : > { %v955_v35 = vmul.f32 %v2232_v33, %v947_v25 }
 0x8ec   : > { %v960_v38 = vmul.f32 %v1886_v34, %v955_v35 }
 0x8ee   : > { %v2472_v39 = vadd.f32 %v1887_v37, %v960_v38  ;;  %v2207_v37 = vld [vmem:[%s2632_s2 + $0x40] sm:$0xff]   ;;  %v2208_v38 = vld [vmem:[%s2632_s2 + $0x58] sm:$0xff]  }
 0x8f0   : > { %v1001_v41 = vpack.c.bf16 %v2472_v39, %v2472_v39 }
 0x8f2   : > { %2095 = vmatmul.mubr.msk.bf16.vlgmr.msra.gmra.mxu0 %vm348_vm1, %v1001_v41 }
 0x8f3   : > { %2099 = vmatpush3.bf16.msra.mxu0 %v2205_v40  ;;  %2102 = vmatprep.mubr.msk.bf16.mxu0 %vm2258_vm0, %v2257_v1 }
 0x8f4   : > { %2100 = vmatprep.subr.bf16.mxu0 %v2257_v1 }
 0x8f7   : > { %2101 = vmatpush3.bf16.msra.mxu0 %v2206_v42 }
 0x8f8   : > { %2112 = vmatprep.subr.bf16.mxu0 %v2257_v1 }
 0x8fa   : > { %2103 = vmatmul.mubr.msk.bf16.vlgmr.msra.gmra.mxu0 %vm348_vm1, %v1001_v41 }
 0x8fb   : > { %2114 = vmatprep.mubr.msk.bf16.mxu0 %vm2258_vm0, %v2257_v1 }
 0x9b2   : > { %v1084_v46 = vpop.f32.mrf.mxu0 }
 0x9b3   : > { %v1085_v47 = vadd.f32 %v1084_v46, %v1028_v45 }
 0x9b4   : > { %v2096_v49 = vpop.f32.mrf.mxu0 }
 0x9b5   : > { %v1142_v50 = vpack.c.bf16 %v1085_v47, %v1085_v47 }
 0x9b6   : > { %v1087_v51 = vpop.f32.mrf.mxu0 }
 0x9b7   : > { %1145 = vrot.lane.b32.xlu0 %v1142_v50, %s2260_s13 }
 0x9b8   : > { %v2097_v53 = vpop.f32.mrf.mxu0 }
 0x9ba   : > { %v1136_v54 = vpop.f32.mrf.mxu0 }
 0x9bb   : > { %v1137_v55 = vadd.f32 %v1136_v54, %v1032_v52 }
 0x9bc   : > { %v2104_v56 = vpop.f32.mrf.mxu0 }
 0x9bd   : > { %v1143_v57 = vpack.c.bf16 %v1137_v55, %v1137_v55  ;;  %v1935_v55 = vld [vmem:[%s2634_s4 + $0x12] ss:$0 sm:$0xff] }
 0x9be   : > { %v1139_v58 = vpop.f32.mrf.mxu0 }
 0x9bf   : > { %1194 = vrot.lane.b32.xlu1 %v1143_v57, %s2260_s13 }
 0x9c0   : > { %v2105_v59 = vpop.f32.mrf.mxu0 }
 0xa29   : > { %v1146_v60 = vpop.permute.xlu0 %1145 }
 0xa2a   : > { %v1151_v61 = vsel %vm449_vm2, %v1146_v60, 0 }
 0xa2b   : > { %2107 = vmatpush3.bf16.xpose.msra.mxu1 %v1151_v61 }
 0xa2c   : > { %2118 = vmatprep.subr.bf16.mxu1 %v2257_v1 }
 0xa31   : > { %v1195_v13 = vpop.permute.xlu1 %1194 }
 0xa32   : > { %v1200_v62 = vsel %vm449_vm2, %v1195_v13, 0  ;;  %2109 = vmatmul.mubr.msk.bf16.vlgmr.msra.gmra.mxu1 %vm449_vm2, %v1142_v50 }
 0xa33   : > { %2113 = vmatpush3.bf16.xpose.msra.mxu0 %v1200_v62  ;;  %2120 = vmatprep.mubr.msk.bf16.mxu1 %vm2258_vm0, %v2257_v1 }
 0xa34   : > { %2124 = vmatprep.subr.bf16.mxu0 %v2257_v1 }
 0xa3a   : > { %2115 = vmatmul.mubr.msk.bf16.vlgmr.msra.gmra.mxu0 %vm449_vm2, %v1143_v57 }
 0xa3b   : > { %2126 = vmatprep.mubr.msk.bf16.mxu0 %vm2258_vm0, %v2257_v1 }
 0xaf2   : > { %v1187_v63 = vpop.f32.mrf.mxu1 }
 0xaf3   : > { %v1188_v0 = vadd.f32 %v2372_v36, %v1187_v63 }
 0xaf4   : > { %v2110_v2 = vpop.f32.mrf.mxu1 }
 0xaf5   : > { %v1242_v3 = vsel %vm545_vm3, %v1188_v0, -inf }
 0xaf6   : > { %1243 = vmax.xlane.f32.xlu0 %v1242_v3  ;;  %v1190_v4 = vpop.f32.mrf.mxu1 }
 0xaf8   : > { %v2111_v6 = vpop.f32.mrf.mxu1 }
 0xaf9   : > { %v2209_v6 = vld [vmem:[%s2633_s3 + $0x38] sm:$0xff]  }
 0xafa   : > { %v1236_v7 = vpop.f32.mrf.mxu0 }
 0xafb   : > { %v1237_v8 = vadd.f32 %v2372_v36, %v1236_v7  ;;  %v2210_v7 = vld [vmem:[%s2633_s3 + $0x30] sm:$0xff]  }
 0xafc   : > { %v2116_v9 = vpop.f32.mrf.mxu0 }
 0xafd   : > { %v1245_v10 = vsel %vm545_vm3, %v1237_v8, -inf }
 0xafe   : > { %1246 = vmax.xlane.f32.xlu1 %v1245_v10  ;;  %v1239_v11 = vpop.f32.mrf.mxu0 }
 0xaff   : > { %v1936_v11 = vld [vmem:[%s2634_s4 + $0x13] ss:$0 sm:$0xff] }
 0xb00   : > { %v2117_v12 = vpop.f32.mrf.mxu0 }
 0xb0f   : > { %1314 = vrot.lane.b32.xlu1 %v1143_v57, %s2261_s17 }
 0xb7f   : > { %v1244_v14 = vpop.xlane.xlu0 %1243 }
 0xb80   : > { %v1248_v15 = vsub.f32 %v1188_v0, %v1244_v14  ;;  %v1937_v14 = vld [vmem:[%s2634_s4 + $0x14] ss:$0 sm:$0xff] }
 0xb82   : > { %v1250_v17 = vmul.f32 1.442695, %v1248_v15 }
 0xb84   : > { %2233 = vpow2.f32 %v1250_v17 }
 0xb87   : > { %v1247_v18 = vpop.xlane.xlu1 %1246 }
 0xb88   : > { %v1249_v19 = vsub.f32 %v1237_v8, %v1247_v18 }
 0xb8a   : > { %v1252_v20 = vmul.f32 1.442695, %v1249_v19  ;;  %v2211_v19 = vld [vmem:[%s2633_s3 + $0x58] sm:$0xff]  }
 0xb8b   : > { %v1315_v21 = vpop.permute.xlu1 %1314 }
 0xb8c   : > { %2235 = vpow2.f32 %v1252_v20  ;;  %v1320_v22 = vsel %vm575_vm4, %v1315_v21, 0  ;;  %v2212_v20 = vld [vmem:[%s2633_s3 + $0x50] sm:$0xff]   ;;  %v2213_v21 = vld [vmem:[%s2633_s3 + $0x48] sm:$0xff]  }
 0xb8d   : > { %2125 = vmatpush3.bf16.msra.mxu0 %v1320_v22  ;;  %v2214_v22 = vld [vmem:[%s2633_s3 + $0x40] sm:$0xff]  }
 0xb8e   : > { %2136 = vmatprep.subr.bf16.mxu0 %v2257_v1 }
 0xb91   : > { %v2234_v36 = vpop.eup %2233 }
 0xb92   : > { %v1254_v23 = vsel %vm545_vm3, %v2234_v36, 0.0 }
 0xb93   : > { %1255 = vadd.xlane.f32.xlu0 %v1254_v23 }
 0xb99   : > { %v2236_v24 = vpop.eup %2235 }
 0xb9a   : > { %v1257_v25 = vsel %vm545_vm3, %v2236_v24, 0.0 }
 0xb9b   : > { %1258 = vadd.xlane.f32.xlu0 %v1257_v25 }
 0xbb1   : > { %1266 = vrot.lane.b32.xlu0 %v1142_v50, %s2261_s17 }
 0xc1c   : > { %v1256_v26 = vpop.xlane.xlu0 %1255 }
 0xc1d   : > { %2237 = vrcp.f32 %v1256_v26 }
 0xc24   : > { %v1259_v27 = vpop.xlane.xlu0 %1258 }
 0xc25   : > { %2239 = vrcp.f32 %v1259_v27 }
 0xc28   : > { %v1267_v28 = vpop.permute.xlu0 %1266 }
 0xc29   : > { %v1272_v29 = vsel %vm575_vm4, %v1267_v28, 0 }
 0xc2a   : > { %v2238_v30 = vpop.eup %2237  ;;  %2119 = vmatpush3.bf16.msra.mxu1 %v1272_v29 }
 0xc2b   : > { %v1262_v31 = vmul.f32 %v2238_v30, %v2234_v36  ;;  %2130 = vmatprep.subr.bf16.mxu1 %v2257_v1  ;;  %v1938_v36 = vld [vmem:[%s2634_s4 + $0x15] ss:$0 sm:$0xff] }
 0xc2d   : > { %v1264_v32 = vpack.c.bf16 %v1262_v31, %v1262_v31 }
 0xc2f   : > { %2121 = vmatmul.mubr.msk.bf16.vlgmr.msra.gmra.mxu1 %vm545_vm3, %v1264_v32 }
 0xc30   : > { %2132 = vmatprep.mubr.msk.bf16.mxu1 %vm2258_vm0, %v2257_v1  ;;  %2131 = vmatpush3.bf16.msra.mxu1 %v2207_v37 }
 0xc31   : > { %2142 = vmatprep.subr.bf16.mxu1 %v2257_v1 }
 0xc32   : > { %v2240_v33 = vpop.eup %2239 }
 0xc33   : > { %v1263_v34 = vmul.f32 %v2240_v33, %v2236_v24 }
 0xc35   : > { %v1265_v35 = vpack.c.bf16 %v1263_v34, %v1263_v34 }
 0xc37   : > { %2127 = vmatmul.mubr.msk.bf16.vlgmr.msra.gmra.mxu0 %vm545_vm3, %v1265_v35 }
 0xc38   : > { %2138 = vmatprep.mubr.msk.bf16.mxu0 %vm2258_vm0, %v2257_v1  ;;  %2137 = vmatpush3.bf16.msra.mxu0 %v2208_v38 }
 0xc39   : > { %2150 = vmatprep.subr.bf16.mxu0 %v2257_v1 }
 0xcef   : > { %v1308_v40 = vpop.f32.mrf.mxu1 }
 0xcf0   : > { %v1362_v41 = vpack.c.bf16 %v1308_v40, %v1308_v40  ;;  %v1942_v40 = vld [vmem:[%s2634_s4 + $0x16] ss:$0 sm:$0xff] }
 0xcf1   : > { %v2122_v42 = vpop.f32.mrf.mxu1 }
 0xcf2   : > { %2133 = vmatmul.mubr.msk.bf16.vlgmr.msra.gmra.mxu1 %vm449_vm2, %v1362_v41 }
 0xcf3   : > { %v1311_v43 = vpop.f32.mrf.mxu1  ;;  %2146 = vmatprep.mubr.msk.bf16.mxu1 %vm2258_vm0, %v2257_v1  ;;  %2143 = vmatpush3.bf16.msra.mxu1 %v2209_v6 }
 0xcf4   : > { %2144 = vmatprep.subr.bf16.mxu1 %v2257_v1 }
 0xcf5   : > { %v2123_v44 = vpop.f32.mrf.mxu1 }
 0xcf7   : > { %v1356_v45 = vpop.f32.mrf.mxu0  ;;  %2145 = vmatpush3.bf16.msra.mxu1 %v2210_v7 }
 0xcf8   : > { %v1363_v5 = vpack.c.bf16 %v1356_v45, %v1356_v45  ;;  %2162 = vmatprep.subr.bf16.mxu1 %v2257_v1 }
 0xcf9   : > { %v2128_v46 = vpop.f32.mrf.mxu0 }
 0xcfa   : > { %2139 = vmatmul.mubr.msk.bf16.vlgmr.msra.gmra.mxu0 %vm449_vm2, %v1363_v5 }
 0xcfb   : > { %v1359_v47 = vpop.f32.mrf.mxu0  ;;  %2158 = vmatprep.mubr.msk.bf16.mxu0 %vm2258_vm0, %v2257_v1  ;;  %2151 = vmatpush3.bf16.msra.mxu0 %v2211_v19 }
 0xcfc   : > { %2152 = vmatprep.subr.bf16.mxu0 %v2257_v1 }
 0xcfd   : > { %v2129_v48 = vpop.f32.mrf.mxu0 }
 0xcff   : > { %2153 = vmatpush3.bf16.msra.mxu0 %v2212_v20 }
 0xd00   : > { %2154 = vmatprep.subr.bf16.mxu0 %v2257_v1 }
 0xd03   : > { %2155 = vmatpush3.bf16.msra.mxu0 %v2213_v21 }
 0xd04   : > { %2156 = vmatprep.subr.bf16.mxu0 %v2257_v1 }
 0xd07   : > { %2157 = vmatpush3.bf16.msra.mxu0 %v2214_v22 }
 0xdb2   : > { %v1407_v49 = vpop.f32.mrf.mxu1 }
 0xdb3   : > { %v1462_v54 = vsel %vm348_vm1, %v1407_v49, 0.0 }
 0xdb4   : > { %v2134_v50 = vpop.f32.mrf.mxu1 }
 0xdb6   : > { %v1410_v51 = vpop.f32.mrf.mxu1 }
 0xdb8   : > { %v2135_v52 = vpop.f32.mrf.mxu1 }
 0xdb9   : > { %v2215_v52 = vld [vmem:[%s2635_s5 + $0x14] ss:$8 sps:$4 sm:$0xff]  }
 0xdba   : > { %v1456_v53 = vpop.f32.mrf.mxu0 }
 0xdbb   : > { %v1463_v56 = vsel %vm348_vm1, %v1456_v53, 0.0  ;;  %v2216_v53 = vld [vmem:[%s2635_s5 + $0x4] ss:$8 sps:$4 sm:$0xff]  }
 0xdbc   : > { %v1464_v57 = vadd.f32 %v1463_v56, %v1462_v54  ;;  %v2140_v58 = vpop.f32.mrf.mxu0 }
 0xdbd   : > { %v1948_v58 = vld [vmem:[%s2634_s4 + $0x17] ss:$0 sm:$0xff] }
 0xdbe   : > { %v1469_v59 = vadd.f32 %v1935_v55, %v1464_v57  ;;  %v1459_v60 = vpop.f32.mrf.mxu0 }
 0xdbf   : > { %v1949_v60 = vld [vmem:[%s2634_s4 + $0x18] ss:$0 sm:$0xff] }
 0xdc0   : > { %v2141_v61 = vpop.f32.mrf.mxu0  ;;  %v1470_v13 = vadd.f32 %v1469_v59, %v2472_v39 }
 0xdc2   : > { %v1471_v62 = vsel %vm348_vm1, %v1470_v13, 0.0 }
 0xdc3   : > { %1472 = vadd.xlane.f32.xlu0 %v1471_v62 }
 0xe4c   : > { %v1473_v63 = vpop.xlane.xlu0 %1472 }
 0xe4d   : > { %v1474_v0 = vmul.f32 0.03125, %v1473_v63  ;;  %v2217_v63 = vld [vmem:[%s2635_s5 + $0x10] ss:$8 sps:$4 sm:$0xff]  }
 0xe4f   : > { %v1475_v2 = vsub.f32 %v1470_v13, %v1474_v0  ;;  %v2218_v0 = vld [vmem:[%s2635_s5] ss:$8 sps:$4 sm:$0xff]  }
 0xe51   : > { %v1476_v3 = vmul.f32 %v1475_v2, %v1475_v2 }
 0xe53   : > { %v1477_v4 = vsel %vm348_vm1, %v1476_v3, 0.0 }
 0xe54   : > { %1478 = vadd.xlane.f32.xlu1 %v1477_v4 }
 0xedd   : > { %v1479_v39 = vpop.xlane.xlu1 %1478 }
 0xede   : > { %v1480_v8 = vmul.f32 0.03125, %v1479_v39 }
 0xee0   : > { %v1481_v9 = vadd.f32 1e-12, %v1480_v8 }
 0xee2   : > { %2241 = vrsqrt.f32 %v1481_v9 }
 0xeef   : > { %v2242_v10 = vpop.eup %2241 }
 0xef0   : > { %v1483_v12 = vmul.f32 %v2242_v10, %v1475_v2  ;;  %v1950_v2 = vld [vmem:[%s2634_s4 + $0x20] sm:$0x1] }
 0xef2   : > { %v1488_v15 = vmul.f32 %v1936_v11, %v1483_v12 }
 0xef4   : > { %v1493_v17 = vadd.f32 %v1937_v14, %v1488_v15 }
 0xef6   : > { %v1494_v18 = vpack.c.bf16 %v1493_v17, %v1493_v17 }
 0xef8   : > { %2147 = vmatmul.mubr.msk.bf16.vlgmr.msra.gmra.mxu1 %vm348_vm1, %v1494_v18 }
 0xef9   : > { %2166 = vmatprep.mubr.msk.bf16.mxu1 %vm2258_vm0, %v2257_v1  ;;  %2163 = vmatpush3.bf16.msra.mxu1 %v2215_v52 }
 0xefa   : > { %2164 = vmatprep.subr.bf16.mxu1 %v2257_v1 }
 0xefd   : > { %2165 = vmatpush3.bf16.msra.mxu1 %v2216_v53 }
 0xefe   : > { %2170 = vmatprep.subr.bf16.mxu1 %v2257_v1 }
 0xfb8   : > { %v1548_v23 = vpop.f32.mrf.mxu1 }
 0xfb9   : > { %v1549_v24 = vadd.f32 %v1938_v36, %v1548_v23 }
 0xfba   : > { %v2148_v25 = vpop.f32.mrf.mxu1 }
 0xfbb   : > { %v1555_v26 = vmul.f32 0.044715, %v1549_v24  ;;  %v1554_v34 = vmul.f32 0.5, %v1549_v24 }
 0xfbc   : > { %v1551_v27 = vpop.f32.mrf.mxu1 }
 0xfbd   : > { %v1556_v28 = vmul.f32 %v1555_v26, %v1549_v24 }
 0xfbe   : > { %v2149_v29 = vpop.f32.mrf.mxu1 }
 0xfbf   : > { %v1557_v30 = vmul.f32 %v1556_v28, %v1549_v24 }
 0xfc1   : > { %v1558_v31 = vadd.f32 %v1557_v30, %v1549_v24 }
 0xfc3   : > { %v1559_v32 = vmul.f32 0.7978845, %v1558_v31 }
 0xfc5   : > { %2243 = vtanh.f32 %v1559_v32 }
 0xfd2   : > { %v2244_v33 = vpop.eup %2243 }
 0xfd3   : > { %v1561_v35 = vadd.f32 1.0, %v2244_v33 }
 0xfd5   : > { %v1562_v37 = vmul.f32 %v1561_v35, %v1554_v34 }
 0xfd7   : > { %v1563_v38 = vpack.c.bf16 %v1562_v37, %v1562_v37 }
 0xfd9   : > { %2159 = vmatmul.mubr.msk.bf16.vlgmr.msra.gmra.mxu0 %vm898_vm5, %v1563_v38 }
0x1099   : > { %v1629_v41 = vpop.f32.mrf.mxu0 }
0x109a   : > { %v1630_v42 = vadd.f32 %v1942_v40, %v1629_v41 }
0x109b   : > { %v2160_v43 = vpop.f32.mrf.mxu0 }
0x109c   : > { %v1635_v44 = vadd.f32 %v1630_v42, %v1493_v17 }
0x109d   : > { %v1632_v45 = vpop.f32.mrf.mxu0 }
0x109e   : > { %v1636_v5 = vsel %vm348_vm1, %v1635_v44, 0.0 }
0x109f   : > { %1637 = vadd.xlane.f32.xlu0 %v1636_v5  ;;  %v2161_v46 = vpop.f32.mrf.mxu0 }
0x1128   : > { %v1638_v47 = vpop.xlane.xlu0 %1637 }
0x1129   : > { %v1639_v48 = vmul.f32 0.03125, %v1638_v47 }
0x112b   : > { %v1640_v49 = vsub.f32 %v1635_v44, %v1639_v48 }
0x112d   : > { %v1641_v50 = vmul.f32 %v1640_v49, %v1640_v49 }
0x112f   : > { %v1642_v51 = vsel %vm348_vm1, %v1641_v50, 0.0 }
0x1130   : > { %1643 = vadd.xlane.f32.xlu0 %v1642_v51 }
0x11b9   : > { %v1644_v54 = vpop.xlane.xlu0 %1643 }
0x11ba   : > { %v1645_v55 = vmul.f32 0.03125, %v1644_v54 }
0x11bc   : > { %v1646_v56 = vadd.f32 1e-12, %v1645_v55 }
0x11be   : > { %2245 = vrsqrt.f32 %v1646_v56 }
0x11cb   : > { %v2246_v57 = vpop.eup %2245 }
0x11cc   : > { %v1648_v59 = vmul.f32 %v2246_v57, %v1640_v49 }
0x11ce   : > { %v1653_v61 = vmul.f32 %v1948_v58, %v1648_v59 }
0x11d0   : > { %v1658_v13 = vadd.f32 %v1949_v60, %v1653_v61 }
0x11d2   : > { %v1670_v62 = vpack.c.bf16 %v1658_v13, %v1658_v13 }
0x11d4   : > { %2167 = vmatmul.mubr.msk.bf16.vlgmr.msra.gmra.mxu1 %vm348_vm1, %v1670_v62 }
0x11d5   : > { %2174 = vmatprep.mubr.msk.bf16.mxu1 %vm2258_vm0, %v2257_v1  ;;  %2171 = vmatpush3.bf16.msra.mxu1 %v2217_v63 }
0x11d6   : > { %2172 = vmatprep.subr.bf16.mxu1 %v2257_v1  ;;  %v1951_v1 = vld [vmem:[%s2634_s4 + $0x21] sm:$0x1] }
0x11d9   : > { %2173 = vmatpush3.bf16.msra.mxu1 %v2218_v0 }
0x1294   : > { %v1720_v3 = vpop.f32.mrf.mxu1 }
0x1295   : > { %v1721_v4 = vadd.f32 %v1950_v2, %v1720_v3 }
0x1296   : > { %v2168_v6 = vpop.f32.mrf.mxu1 }
0x1297   : > { %2247 = vtanh.f32 %v1721_v4 }
0x1298   : > { %v1723_v7 = vpop.f32.mrf.mxu1 }
0x129a   : > { %v2169_v39 = vpop.f32.mrf.mxu1 }
0x12a4   : > { %v2248_v8 = vpop.eup %2247 }
0x12a5   : > { %v1727_v9 = vpack.c.bf16 %v2248_v8, %v2248_v8 }
0x12a7   : > { %2175 = vmatmul.mubr.msk.bf16.vlgmr.msra.gmra.mxu1 %vm348_vm1, %v1727_v9 }
0x1367   : > { %v1777_v10 = vpop.f32.mrf.mxu1 }
0x1368   : > { %v1778_v11 = vadd.f32 %v1951_v1, %v1777_v10 }
0x1369   : > { %v2176_v12 = vpop.f32.mrf.mxu1 }
0x136a   : > { %v1786_v14 = vrot.slane %v1778_v11, %v2351_v16 }
0x136b   : > { %v1780_v15 = vpop.f32.mrf.mxu1 }
0x136c   : > { %1787 = vst [vmem:[%s260_s20] sm:$0xff] %v1786_v14 }
0x136d   : > { %v2177_v17 = vpop.f32.mrf.mxu1 }
0x136e PF: > { %s16_s21 = sadd.s32 1, %s2255_s21  }
0x136f   : > { %p13_p4 = scmp.ge.s32.totalorder %s16_s21, 4  }
0x1371   :  { %15 = sbr.rel (!%p13_p4) target bundleno = 1 (0x1), region = 81 }

</bundles_post_ra>
